<compile_context>
chip_gen: v5e
topology: v5e:2x2
jax: 0.10.0
libtpu: 0.0.40
codegen_flags: <defaults>
</compile_context>

<pallas_src>
import functools

import jax
import jax.numpy as jnp
from jax import lax
from jax.experimental import pallas as pl
from jax.experimental.pallas import tpu as pltpu


def _round_up(n, m):
    return ((n + m - 1) // m) * m


# ----------------------------------------------------------------------------
# Pallas kernel: one batch shard (Bp=8 rows) of the whole forward pass
# ----------------------------------------------------------------------------
def _seq_classifier_kernel(
    x_ref,        # (T*Bp, D)    bf16, time-major rows: t*Bp + b
    wih0_ref,     # (D, 4H)      bf16, packed gate columns [i|f|g|o]
    whh0_ref,     # (H, 4H)      bf16
    wih1_ref,     # (H, 4H)      bf16
    whh1_ref,     # (H, 4H)      bf16
    b0_ref,       # (1, 4H)      f32  (bias_ih_l0 + bias_hh_l0)
    b1_ref,       # (1, 4H)      f32
    wcls_ref,     # (H, Cp)      bf16 (zero-padded columns >= C)
    bcls_ref,     # (1, Cp)      f32
    wgen_ref,     # (H, Dp)      bf16 (zero-padded columns >= D)
    bgen_ref,     # (1, Dp)      f32
    cls_out_ref,  # (Bp, Cp)     f32
    gen_out_ref,  # (P*Bp, Dp)   f32, time-major flattened
    xproj_ref,    # scratch (T*Bp, 4H) f32 : layer-0 input projection
    h1_all_ref,   # scratch (T*Bp, H)  f32 : layer-1 hidden history
    *, T, P, Bp,
):
    D = x_ref.shape[1]
    H = whh0_ref.shape[0]
    G = whh0_ref.shape[1]              # 4*H, packed gates (PyTorch order i,f,g,o)
    Dp = gen_out_ref.shape[1]
    bf16, f32 = jnp.bfloat16, jnp.float32

    # Only the small biases are hoisted / broadcast; weights stay in their refs
    # and are read at each dot (vld feeding the MXU push, no vreg spill churn).
    b0 = jnp.broadcast_to(b0_ref[...], (Bp, G))
    b1 = jnp.broadcast_to(b1_ref[...], (Bp, G))

    def gates_to_hc(gates, c):
        # gates: (Bp, 4H) f32 packed [i|f|g|o]; c: (Bp, H) f32.
        sig = jax.nn.sigmoid(gates)          # one EUP pass covers i, f, o
        tnh = jnp.tanh(gates)                # one EUP pass covers g
        i = sig[:, 0 * H:1 * H]
        f = sig[:, 1 * H:2 * H]
        g = tnh[:, 2 * H:3 * H]
        o = sig[:, 3 * H:4 * H]
        c_new = f * c + i * g
        return o * jnp.tanh(c_new), c_new

    # ---- layer-0 input projection for ALL observed steps: one bulk matmul ---
    xproj_ref[...] = jnp.dot(x_ref[...], wih0_ref[...],
                             preferred_element_type=f32)

    zero = jnp.zeros((Bp, H), f32)

    # ---- serial recurrence over the observed sequence ------------------------
    def step_observed(t, carry):
        h0, c0, h1, c1 = carry
        r = pl.multiple_of(t * Bp, Bp)
        g0 = (xproj_ref[pl.ds(r, Bp), :]
              + jnp.dot(h0.astype(bf16), whh0_ref[...], preferred_element_type=f32)
              + b0)
        h0, c0 = gates_to_hc(g0, c0)
        g1 = (jnp.dot(h0.astype(bf16), wih1_ref[...], preferred_element_type=f32)
              + jnp.dot(h1.astype(bf16), whh1_ref[...], preferred_element_type=f32)
              + b1)
        h1, c1 = gates_to_hc(g1, c1)
        h1_all_ref[pl.ds(r, Bp), :] = h1
        return (h0, c0, h1, c1)

    h0, c0, h1, c1 = lax.fori_loop(0, T, step_observed, (zero, zero, zero, zero),
                                   unroll=min(8, T))

    # ---- classification from lstm_out[:, -1, :] (lane-dense Cp store) --------
    cls_out_ref[...] = (jnp.dot(h1.astype(bf16), wcls_ref[...],
                                preferred_element_type=f32)
                        + bcls_ref[...])

    # ---- generator projection of the observed steps, in <=256-row chunks -----
    Tg = min(T, P)                         # predict_length < seq_length guard
    CH = 32                                # steps per chunk (CH*Bp rows)

    def project_rows(r0, nrows):
        h_blk = h1_all_ref[pl.ds(r0, nrows), :].astype(bf16)
        gen_out_ref[pl.ds(r0, nrows), :] = (
            jnp.dot(h_blk, wgen_ref[...], preferred_element_type=f32)
            + bgen_ref[...])

    n_full = Tg // CH
    if n_full > 0:
        def gen_chunk(ci, carry):
            project_rows(pl.multiple_of(ci * (CH * Bp), Bp), CH * Bp)
            return carry
        lax.fori_loop(0, n_full, gen_chunk, 0)
    if Tg - n_full * CH > 0:
        project_rows(n_full * CH * Bp, (Tg - n_full * CH) * Bp)

    # ---- autoregressive continuation (predict_length > seq_length) -----------
    if P > T:
        bgen_b = jnp.broadcast_to(bgen_ref[...], (Bp, Dp))
        y0 = (jnp.dot(h1.astype(bf16), wgen_ref[...], preferred_element_type=f32)
              + bgen_b)                    # generator output of last observed step

        def step_autoreg(t, carry):
            h0, c0, h1, c1, y = carry
            y_in = y[:, :D].astype(bf16)   # padded lanes of y are exact zeros
            g0 = (jnp.dot(y_in, wih0_ref[...], preferred_element_type=f32)
                  + jnp.dot(h0.astype(bf16), whh0_ref[...], preferred_element_type=f32)
                  + b0)
            h0, c0 = gates_to_hc(g0, c0)
            g1 = (jnp.dot(h0.astype(bf16), wih1_ref[...], preferred_element_type=f32)
                  + jnp.dot(h1.astype(bf16), whh1_ref[...], preferred_element_type=f32)
                  + b1)
            h1, c1 = gates_to_hc(g1, c1)
            y = (jnp.dot(h1.astype(bf16), wgen_ref[...], preferred_element_type=f32)
                 + bgen_b)
            r = pl.multiple_of(t * Bp, Bp)
            gen_out_ref[pl.ds(r, Bp), :] = y    # lane-dense (Dp) store
            return (h0, c0, h1, c1, y)

        lax.fori_loop(T, P, step_autoreg, (h0, c0, h1, c1, y0),
                      unroll=min(8, P - T))


# ----------------------------------------------------------------------------
# Wrapper: parameter plumbing + pallas_call (grid over 8-row batch shards)
# ----------------------------------------------------------------------------
@functools.partial(jax.jit, static_argnames=("predict_length",))
def sequence_classifier_forward(x, params, predict_length=None):
    """x: (B, T, D_in) float32, batch-first like the PyTorch module."""
    B, T, D = x.shape
    P = T if predict_length is None else int(predict_length)
    H = params["whh0"].shape[1]        # weight_hh_l0: (4H, H)
    C = params["wcls"].shape[0]        # classifier weight: (C, H)
    G = 4 * H
    Bp = 8                             # rows per batch shard (one sublane tile)
    S = -(-B // Bp)                    # number of batch shards (grid size)
    Btot = S * Bp
    Cp = _round_up(C, 128)
    Dp = _round_up(D, 128)
    f32, bf16 = jnp.float32, jnp.bfloat16

    # bf16 matmul weights in x @ W layout; gate columns keep PyTorch i,f,g,o order.
    wih0 = params["wih0"].T.astype(bf16)                    # (D, 4H)
    whh0 = params["whh0"].T.astype(bf16)                    # (H, 4H)
    wih1 = params["wih1"].T.astype(bf16)
    whh1 = params["whh1"].T.astype(bf16)
    b0 = (params["bih0"] + params["bhh0"]).reshape(1, G).astype(f32)
    b1 = (params["bih1"] + params["bhh1"]).reshape(1, G).astype(f32)
    wcls = jnp.zeros((H, Cp), bf16).at[:, :C].set(params["wcls"].T.astype(bf16))
    bcls = jnp.zeros((1, Cp), f32).at[0, :C].set(params["bcls"])
    wgen = jnp.zeros((H, Dp), bf16).at[:, :D].set(params["wgen"].T.astype(bf16))
    bgen = jnp.zeros((1, Dp), f32).at[0, :D].set(params["bgen"])

    # shard-major, time-major, feature-compact input: (S, T*Bp, D) bf16
    xf = jnp.pad(x.astype(bf16), ((0, Btot - B), (0, 0), (0, 0)))
    x_sh = xf.reshape(S, Bp, T, D).transpose(0, 2, 1, 3).reshape(S, T * Bp, D)

    kernel = functools.partial(_seq_classifier_kernel, T=T, P=P, Bp=Bp)

    # VMEM footprint estimate -> explicit limit (handles v5e's 16 MiB default).
    est = (2 * T * Bp * D * 2
           + 2 * (P * Bp * Dp * 4 + Bp * Cp * 4)
           + T * Bp * G * 4 + T * Bp * H * 4
           + 2 * ((D + 3 * H) * G * 2 + H * (Cp + Dp) * 2 + (2 * G + Cp + Dp) * 4))
    vmem_limit = int(min(64 * 2**20, max(32 * 2**20, 2 * est)))
    # TODO(synk): for very long sequences on v7x (64 MiB VMEM) stream xproj /
    # gen_out in time chunks (grid axis or manual DMA) instead of raising the limit.

    grid_spec = pltpu.PrefetchScalarGridSpec(
        num_scalar_prefetch=0,
        grid=(S,),
        in_specs=[
            pl.BlockSpec((None, T * Bp, D), lambda s: (s, 0, 0)),
            pl.BlockSpec((D, G), lambda s: (0, 0)),
            pl.BlockSpec((H, G), lambda s: (0, 0)),
            pl.BlockSpec((H, G), lambda s: (0, 0)),
            pl.BlockSpec((H, G), lambda s: (0, 0)),
            pl.BlockSpec((1, G), lambda s: (0, 0)),
            pl.BlockSpec((1, G), lambda s: (0, 0)),
            pl.BlockSpec((H, Cp), lambda s: (0, 0)),
            pl.BlockSpec((1, Cp), lambda s: (0, 0)),
            pl.BlockSpec((H, Dp), lambda s: (0, 0)),
            pl.BlockSpec((1, Dp), lambda s: (0, 0)),
        ],
        out_specs=(
            pl.BlockSpec((None, Bp, Cp), lambda s: (s, 0, 0)),
            pl.BlockSpec((None, P * Bp, Dp), lambda s: (s, 0, 0)),
        ),
        scratch_shapes=[
            pltpu.VMEM((T * Bp, G), jnp.float32),   # layer-0 input projection
            pltpu.VMEM((T * Bp, H), jnp.float32),   # layer-1 hidden history
        ],
    )

    cls_sh, gen_sh = pl.pallas_call(
        kernel,
        out_shape=(jax.ShapeDtypeStruct((S, Bp, Cp), f32),
                   jax.ShapeDtypeStruct((S, P * Bp, Dp), f32)),
        grid_spec=grid_spec,
        compiler_params=pltpu.CompilerParams(
            dimension_semantics=("parallel",),     # batch shards -> both TCs on v7x
            vmem_limit_bytes=vmem_limit),
    )(x_sh, wih0, whh0, wih1, whh1, b0, b1, wcls, bcls, wgen, bgen)

    cls = cls_sh.reshape(Btot, Cp)[:B, :C]
    gen = (gen_sh.reshape(S, P, Bp, Dp).transpose(0, 2, 1, 3)
           .reshape(Btot, P, Dp)[:B, :, :D])
    return cls, gen


# ----------------------------------------------------------------------------
# Deterministic parameter init (PyTorch-style U(-1/sqrt(H), 1/sqrt(H)))
# ----------------------------------------------------------------------------
def init_params(key, input_size, hidden_size, num_classes):
    H, D, C = hidden_size, input_size, num_classes
    bound = 1.0 / jnp.sqrt(jnp.float32(H))
    names_shapes = [
        ("wih0", (4 * H, D)), ("whh0", (4 * H, H)), ("bih0", (4 * H,)), ("bhh0", (4 * H,)),
        ("wih1", (4 * H, H)), ("whh1", (4 * H, H)), ("bih1", (4 * H,)), ("bhh1", (4 * H,)),
        ("wcls", (C, H)), ("bcls", (C,)),
        ("wgen", (D, H)), ("bgen", (D,)),
    ]
    params = {}
    for name, shape in names_shapes:
        key, sub = jax.random.split(key)
        params[name] = jax.random.uniform(
            sub, shape, dtype=jnp.float32, minval=-bound, maxval=bound)
    return params


# ----------------------------------------------------------------------------
# Pure-JAX float32 reference (for correctness check)
# ----------------------------------------------------------------------------
def ref_forward(x, params, predict_length=None):
    B, T, D = x.shape
    P = T if predict_length is None else predict_length
    H = params["whh0"].shape[1]

    def cell(x_t, h, c, wih, whh, bih, bhh):
        gates = x_t @ wih.T + h @ whh.T + bih + bhh
        i = jax.nn.sigmoid(gates[:, :H])
        f = jax.nn.sigmoid(gates[:, H:2 * H])
        g = jnp.tanh(gates[:, 2 * H:3 * H])
        o = jax.nn.sigmoid(gates[:, 3 * H:])
        c_new = f * c + i * g
        return o * jnp.tanh(c_new), c_new

    h0 = c0 = h1 = c1 = jnp.zeros((B, H), jnp.float32)
    gen = []
    y = None
    for t in range(T):
        h0, c0 = cell(x[:, t, :], h0, c0, params["wih0"], params["whh0"],
                      params["bih0"], params["bhh0"])
        h1, c1 = cell(h0, h1, c1, params["wih1"], params["whh1"],
                      params["bih1"], params["bhh1"])
        y = h1 @ params["wgen"].T + params["bgen"]
        if t < P:
            gen.append(y)
    cls = h1 @ params["wcls"].T + params["bcls"]
    for t in range(T, P):
        h0, c0 = cell(y, h0, c0, params["wih0"], params["whh0"],
                      params["bih0"], params["bhh0"])
        h1, c1 = cell(h0, h1, c1, params["wih1"], params["whh1"],
                      params["bih1"], params["bhh1"])
        y = h1 @ params["wgen"].T + params["bgen"]
        gen.append(y)
    return cls, jnp.stack(gen, axis=1)


# ----------------------------------------------------------------------------
if __name__ == "__main__":
    B, T, D_in = 2, 8, 4
    H, C = 32, 3
    ATOL = RTOL = 3e-2   # bf16 matmuls (f32 accumulation) vs. pure-f32 reference

    key = jax.random.PRNGKey(0)
    kx, kp = jax.random.split(key)
    x = jax.random.normal(kx, (B, T, D_in), dtype=jnp.float32)
    params = init_params(kp, D_in, H, C)

    # default forward (predict_length == seq_length)
    cls_out, gen_out = sequence_classifier_forward(x, params)
    jax.block_until_ready((cls_out, gen_out))
    cls_ref, gen_ref = ref_forward(x, params)
    assert cls_out.shape == (B, C) and gen_out.shape == (B, T, D_in)
    assert jnp.allclose(cls_out, cls_ref, atol=ATOL, rtol=RTOL)
    assert jnp.allclose(gen_out, gen_ref, atol=ATOL, rtol=RTOL)

    # autoregressive case (predict_length > seq_length)
    cls2, gen2 = sequence_classifier_forward(x, params, predict_length=T + 4)
    jax.block_until_ready((cls2, gen2))
    cls_ref2, gen_ref2 = ref_forward(x, params, predict_length=T + 4)
    assert gen2.shape == (B, T + 4, D_in)
    assert jnp.allclose(cls2, cls_ref2, atol=ATOL, rtol=RTOL)
    assert jnp.allclose(gen2, gen_ref2, atol=ATOL, rtol=RTOL)

    # truncated case (predict_length < seq_length)
    cls3, gen3 = sequence_classifier_forward(x, params, predict_length=T - 3)
    jax.block_until_ready((cls3, gen3))
    cls_ref3, gen_ref3 = ref_forward(x, params, predict_length=T - 3)
    assert gen3.shape == (B, T - 3, D_in)
    assert jnp.allclose(cls3, cls_ref3, atol=ATOL, rtol=RTOL)
    assert jnp.allclose(gen3, gen_ref3, atol=ATOL, rtol=RTOL)

    print("KERNEL_OK")
</pallas_src>

<mosaic_0001>
module attributes {stable_mosaic.version = 11 : i64} {
  func.func @_seq_classifier_kernel(%arg0: i32, %arg1: memref<1x64x4xbf16, #tpu.memory_space<vmem>>, %arg2: memref<4x128xbf16, #tpu.memory_space<vmem>>, %arg3: memref<32x128xbf16, #tpu.memory_space<vmem>>, %arg4: memref<32x128xbf16, #tpu.memory_space<vmem>>, %arg5: memref<32x128xbf16, #tpu.memory_space<vmem>>, %arg6: memref<1x128xf32, #tpu.memory_space<vmem>>, %arg7: memref<1x128xf32, #tpu.memory_space<vmem>>, %arg8: memref<32x128xbf16, #tpu.memory_space<vmem>>, %arg9: memref<1x128xf32, #tpu.memory_space<vmem>>, %arg10: memref<32x128xbf16, #tpu.memory_space<vmem>>, %arg11: memref<1x128xf32, #tpu.memory_space<vmem>>, %arg12: memref<1x8x128xf32, #tpu.memory_space<vmem>>, %arg13: memref<1x64x128xf32, #tpu.memory_space<vmem>>, %arg14: memref<64x128xf32, #tpu.memory_space<vmem>>, %arg15: memref<64x32xf32, #tpu.memory_space<vmem>>) attributes {dimension_semantics = [#tpu.dimension_semantics<parallel>], iteration_bounds = array<i64: 1>, scalar_prefetch = 0 : i64, scratch_operands = 2 : i64, tpu.core_type = #tpu.core_type<tc>, window_params = [{transform_indices = @transform_0, window_bounds = array<i64: 1, 64, 4>}, {pipeline_mode = #tpu.pipeline_mode<synchronous>, transform_indices = @transform_1, window_bounds = array<i64: 4, 128>}, {pipeline_mode = #tpu.pipeline_mode<synchronous>, transform_indices = @transform_2, window_bounds = array<i64: 32, 128>}, {pipeline_mode = #tpu.pipeline_mode<synchronous>, transform_indices = @transform_3, window_bounds = array<i64: 32, 128>}, {pipeline_mode = #tpu.pipeline_mode<synchronous>, transform_indices = @transform_4, window_bounds = array<i64: 32, 128>}, {pipeline_mode = #tpu.pipeline_mode<synchronous>, transform_indices = @transform_5, window_bounds = array<i64: 1, 128>}, {pipeline_mode = #tpu.pipeline_mode<synchronous>, transform_indices = @transform_6, window_bounds = array<i64: 1, 128>}, {pipeline_mode = #tpu.pipeline_mode<synchronous>, transform_indices = @transform_7, window_bounds = array<i64: 32, 128>}, {pipeline_mode = #tpu.pipeline_mode<synchronous>, transform_indices = @transform_8, window_bounds = array<i64: 1, 128>}, {pipeline_mode = #tpu.pipeline_mode<synchronous>, transform_indices = @transform_9, window_bounds = array<i64: 32, 128>}, {pipeline_mode = #tpu.pipeline_mode<synchronous>, transform_indices = @transform_10, window_bounds = array<i64: 1, 128>}, {transform_indices = @transform_11, window_bounds = array<i64: 1, 8, 128>}, {transform_indices = @transform_12, window_bounds = array<i64: 1, 64, 128>}]} {
    %c0 = arith.constant 0 : index
    %c0_0 = arith.constant 0 : index
    %0 = vector.load %arg6[%c0, %c0_0] : memref<1x128xf32, #tpu.memory_space<vmem>>, vector<1x128xf32>
    %1 = vector.shape_cast %0 : vector<1x128xf32> to vector<1x128xf32>
    %2 = vector.broadcast %1 : vector<1x128xf32> to vector<8x128xf32>
    %c0_1 = arith.constant 0 : index
    %c0_2 = arith.constant 0 : index
    %3 = vector.load %arg7[%c0_1, %c0_2] : memref<1x128xf32, #tpu.memory_space<vmem>>, vector<1x128xf32>
    %4 = vector.shape_cast %3 : vector<1x128xf32> to vector<1x128xf32>
    %5 = vector.broadcast %4 : vector<1x128xf32> to vector<8x128xf32>
    %c0_3 = arith.constant 0 : index
    %c0_4 = arith.constant 0 : index
    %c0_5 = arith.constant 0 : index
    %6 = vector.load %arg1[%c0_3, %c0_4, %c0_5] : memref<1x64x4xbf16, #tpu.memory_space<vmem>>, vector<1x64x4xbf16>
    %7 = vector.shape_cast %6 : vector<1x64x4xbf16> to vector<64x4xbf16>
    %c0_6 = arith.constant 0 : index
    %c0_7 = arith.constant 0 : index
    %8 = vector.load %arg2[%c0_6, %c0_7] : memref<4x128xbf16, #tpu.memory_space<vmem>>, vector<4x128xbf16>
    %cst = arith.constant dense<0.000000e+00> : vector<64x128xf32>
    %9 = tpu.matmul %7, %8, %cst {dimension_numbers = #tpu.dot_dimension_numbers<[1], [0], [0], [1], [0, 0, 1, 1], [], []>} : vector<64x4xbf16>, vector<4x128xbf16>, vector<64x128xf32> -> vector<64x128xf32>
    %c0_8 = arith.constant 0 : index
    %c0_9 = arith.constant 0 : index
    %10 = vector.load %arg14[%c0_8, %c0_9] : memref<64x128xf32, #tpu.memory_space<vmem>>, vector<64x128xf32>
    tpu.vector_store %arg14[%c0_8, %c0_9], %9 {strides = array<i32>} : memref<64x128xf32, #tpu.memory_space<vmem>>, vector<64x128xf32>,
    %cst_10 = arith.constant 0.000000e+00 : f32
    %11 = vector.broadcast %cst_10 : f32 to vector<8x32xf32>
    %c0_i32 = arith.constant 0 : i32
    %c8_i32 = arith.constant 8 : i32
    %12 = arith.muli %c0_i32, %c8_i32 : i32
    %13 = tpu.assume_multiple %12, 8 : i32
    %14 = arith.index_cast %13 : i32 to index
    %c0_11 = arith.constant 0 : index
    %15 = vector.load %arg14[%14, %c0_11] : memref<64x128xf32, #tpu.memory_space<vmem>>, vector<8x128xf32>
    %16 = arith.truncf %11 : vector<8x32xf32> to vector<8x32xbf16>
    %c0_12 = arith.constant 0 : index
    %c0_13 = arith.constant 0 : index
    %17 = vector.load %arg3[%c0_12, %c0_13] : memref<32x128xbf16, #tpu.memory_space<vmem>>, vector<32x128xbf16>
    %cst_14 = arith.constant dense<0.000000e+00> : vector<8x128xf32>
    %18 = tpu.matmul %16, %17, %cst_14 {dimension_numbers = #tpu.dot_dimension_numbers<[1], [0], [0], [1], [0, 0, 1, 1], [], []>} : vector<8x32xbf16>, vector<32x128xbf16>, vector<8x128xf32> -> vector<8x128xf32>
    %19 = arith.addf %15, %18 : vector<8x128xf32>
    %20 = arith.addf %19, %2 : vector<8x128xf32>
    %21 = arith.negf %20 : vector<8x128xf32>
    %22 = math.exp %21 : vector<8x128xf32>
    %cst_15 = arith.constant 1.000000e+00 : f32
    %23 = vector.broadcast %cst_15 : f32 to vector<8x128xf32>
    %24 = arith.addf %23, %22 : vector<8x128xf32>
    %25 = arith.divf %23, %24 : vector<8x128xf32>
    %26 = math.tanh %20 : vector<8x128xf32>
    %27 = vector.extract_strided_slice %25 {offsets = [0, 0], sizes = [8, 32], strides = [1, 1]} : vector<8x128xf32> to vector<8x32xf32>
    %28 = vector.extract_strided_slice %25 {offsets = [0, 32], sizes = [8, 32], strides = [1, 1]} : vector<8x128xf32> to vector<8x32xf32>
    %29 = vector.extract_strided_slice %26 {offsets = [0, 64], sizes = [8, 32], strides = [1, 1]} : vector<8x128xf32> to vector<8x32xf32>
    %30 = vector.extract_strided_slice %25 {offsets = [0, 96], sizes = [8, 32], strides = [1, 1]} : vector<8x128xf32> to vector<8x32xf32>
    %31 = arith.mulf %28, %11 : vector<8x32xf32>
    %32 = arith.mulf %27, %29 : vector<8x32xf32>
    %33 = arith.addf %31, %32 : vector<8x32xf32>
    %34 = math.tanh %33 : vector<8x32xf32>
    %35 = arith.mulf %30, %34 : vector<8x32xf32>
    %36 = arith.truncf %35 : vector<8x32xf32> to vector<8x32xbf16>
    %c0_16 = arith.constant 0 : index
    %c0_17 = arith.constant 0 : index
    %37 = vector.load %arg4[%c0_16, %c0_17] : memref<32x128xbf16, #tpu.memory_space<vmem>>, vector<32x128xbf16>
    %cst_18 = arith.constant dense<0.000000e+00> : vector<8x128xf32>
    %38 = tpu.matmul %36, %37, %cst_18 {dimension_numbers = #tpu.dot_dimension_numbers<[1], [0], [0], [1], [0, 0, 1, 1], [], []>} : vector<8x32xbf16>, vector<32x128xbf16>, vector<8x128xf32> -> vector<8x128xf32>
    %39 = arith.truncf %11 : vector<8x32xf32> to vector<8x32xbf16>
    %c0_19 = arith.constant 0 : index
    %c0_20 = arith.constant 0 : index
    %40 = vector.load %arg5[%c0_19, %c0_20] : memref<32x128xbf16, #tpu.memory_space<vmem>>, vector<32x128xbf16>
    %cst_21 = arith.constant dense<0.000000e+00> : vector<8x128xf32>
    %41 = tpu.matmul %39, %40, %cst_21 {dimension_numbers = #tpu.dot_dimension_numbers<[1], [0], [0], [1], [0, 0, 1, 1], [], []>} : vector<8x32xbf16>, vector<32x128xbf16>, vector<8x128xf32> -> vector<8x128xf32>
    %42 = arith.addf %38, %41 : vector<8x128xf32>
    %43 = arith.addf %42, %5 : vector<8x128xf32>
    %44 = arith.negf %43 : vector<8x128xf32>
    %45 = math.exp %44 : vector<8x128xf32>
    %cst_22 = arith.constant 1.000000e+00 : f32
    %46 = vector.broadcast %cst_22 : f32 to vector<8x128xf32>
    %47 = arith.addf %46, %45 : vector<8x128xf32>
    %48 = arith.divf %46, %47 : vector<8x128xf32>
    %49 = math.tanh %43 : vector<8x128xf32>
    %50 = vector.extract_strided_slice %48 {offsets = [0, 0], sizes = [8, 32], strides = [1, 1]} : vector<8x128xf32> to vector<8x32xf32>
    %51 = vector.extract_strided_slice %48 {offsets = [0, 32], sizes = [8, 32], strides = [1, 1]} : vector<8x128xf32> to vector<8x32xf32>
    %52 = vector.extract_strided_slice %49 {offsets = [0, 64], sizes = [8, 32], strides = [1, 1]} : vector<8x128xf32> to vector<8x32xf32>
    %53 = vector.extract_strided_slice %48 {offsets = [0, 96], sizes = [8, 32], strides = [1, 1]} : vector<8x128xf32> to vector<8x32xf32>
    %54 = arith.mulf %51, %11 : vector<8x32xf32>
    %55 = arith.mulf %50, %52 : vector<8x32xf32>
    %56 = arith.addf %54, %55 : vector<8x32xf32>
    %57 = math.tanh %56 : vector<8x32xf32>
    %58 = arith.mulf %53, %57 : vector<8x32xf32>
    %59 = arith.index_cast %13 : i32 to index
    %c0_23 = arith.constant 0 : index
    %60 = vector.load %arg15[%59, %c0_23] : memref<64x32xf32, #tpu.memory_space<vmem>>, vector<8x32xf32>
    tpu.vector_store %arg15[%59, %c0_23], %58 {strides = array<i32>} : memref<64x32xf32, #tpu.memory_space<vmem>>, vector<8x32xf32>,
    %c1_i32 = arith.constant 1 : i32
    %c8_i32_24 = arith.constant 8 : i32
    %61 = arith.muli %c1_i32, %c8_i32_24 : i32
    %62 = tpu.assume_multiple %61, 8 : i32
    %63 = arith.index_cast %62 : i32 to index
    %c0_25 = arith.constant 0 : index
    %64 = vector.load %arg14[%63, %c0_25] : memref<64x128xf32, #tpu.memory_space<vmem>>, vector<8x128xf32>
    %65 = arith.truncf %35 : vector<8x32xf32> to vector<8x32xbf16>
    %c0_26 = arith.constant 0 : index
    %c0_27 = arith.constant 0 : index
    %66 = vector.load %arg3[%c0_26, %c0_27] : memref<32x128xbf16, #tpu.memory_space<vmem>>, vector<32x128xbf16>
    %cst_28 = arith.constant dense<0.000000e+00> : vector<8x128xf32>
    %67 = tpu.matmul %65, %66, %cst_28 {dimension_numbers = #tpu.dot_dimension_numbers<[1], [0], [0], [1], [0, 0, 1, 1], [], []>} : vector<8x32xbf16>, vector<32x128xbf16>, vector<8x128xf32> -> vector<8x128xf32>
    %68 = arith.addf %64, %67 : vector<8x128xf32>
    %69 = arith.addf %68, %2 : vector<8x128xf32>
    %70 = arith.negf %69 : vector<8x128xf32>
    %71 = math.exp %70 : vector<8x128xf32>
    %cst_29 = arith.constant 1.000000e+00 : f32
    %72 = vector.broadcast %cst_29 : f32 to vector<8x128xf32>
    %73 = arith.addf %72, %71 : vector<8x128xf32>
    %74 = arith.divf %72, %73 : vector<8x128xf32>
    %75 = math.tanh %69 : vector<8x128xf32>
    %76 = vector.extract_strided_slice %74 {offsets = [0, 0], sizes = [8, 32], strides = [1, 1]} : vector<8x128xf32> to vector<8x32xf32>
    %77 = vector.extract_strided_slice %74 {offsets = [0, 32], sizes = [8, 32], strides = [1, 1]} : vector<8x128xf32> to vector<8x32xf32>
    %78 = vector.extract_strided_slice %75 {offsets = [0, 64], sizes = [8, 32], strides = [1, 1]} : vector<8x128xf32> to vector<8x32xf32>
    %79 = vector.extract_strided_slice %74 {offsets = [0, 96], sizes = [8, 32], strides = [1, 1]} : vector<8x128xf32> to vector<8x32xf32>
    %80 = arith.mulf %77, %33 : vector<8x32xf32>
    %81 = arith.mulf %76, %78 : vector<8x32xf32>
    %82 = arith.addf %80, %81 : vector<8x32xf32>
    %83 = math.tanh %82 : vector<8x32xf32>
    %84 = arith.mulf %79, %83 : vector<8x32xf32>
    %85 = arith.truncf %84 : vector<8x32xf32> to vector<8x32xbf16>
    %c0_30 = arith.constant 0 : index
    %c0_31 = arith.constant 0 : index
    %86 = vector.load %arg4[%c0_30, %c0_31] : memref<32x128xbf16, #tpu.memory_space<vmem>>, vector<32x128xbf16>
    %cst_32 = arith.constant dense<0.000000e+00> : vector<8x128xf32>
    %87 = tpu.matmul %85, %86, %cst_32 {dimension_numbers = #tpu.dot_dimension_numbers<[1], [0], [0], [1], [0, 0, 1, 1], [], []>} : vector<8x32xbf16>, vector<32x128xbf16>, vector<8x128xf32> -> vector<8x128xf32>
    %88 = arith.truncf %58 : vector<8x32xf32> to vector<8x32xbf16>
    %c0_33 = arith.constant 0 : index
    %c0_34 = arith.constant 0 : index
    %89 = vector.load %arg5[%c0_33, %c0_34] : memref<32x128xbf16, #tpu.memory_space<vmem>>, vector<32x128xbf16>
    %cst_35 = arith.constant dense<0.000000e+00> : vector<8x128xf32>
    %90 = tpu.matmul %88, %89, %cst_35 {dimension_numbers = #tpu.dot_dimension_numbers<[1], [0], [0], [1], [0, 0, 1, 1], [], []>} : vector<8x32xbf16>, vector<32x128xbf16>, vector<8x128xf32> -> vector<8x128xf32>
    %91 = arith.addf %87, %90 : vector<8x128xf32>
    %92 = arith.addf %91, %5 : vector<8x128xf32>
    %93 = arith.negf %92 : vector<8x128xf32>
    %94 = math.exp %93 : vector<8x128xf32>
    %cst_36 = arith.constant 1.000000e+00 : f32
    %95 = vector.broadcast %cst_36 : f32 to vector<8x128xf32>
    %96 = arith.addf %95, %94 : vector<8x128xf32>
    %97 = arith.divf %95, %96 : vector<8x128xf32>
    %98 = math.tanh %92 : vector<8x128xf32>
    %99 = vector.extract_strided_slice %97 {offsets = [0, 0], sizes = [8, 32], strides = [1, 1]} : vector<8x128xf32> to vector<8x32xf32>
    %100 = vector.extract_strided_slice %97 {offsets = [0, 32], sizes = [8, 32], strides = [1, 1]} : vector<8x128xf32> to vector<8x32xf32>
    %101 = vector.extract_strided_slice %98 {offsets = [0, 64], sizes = [8, 32], strides = [1, 1]} : vector<8x128xf32> to vector<8x32xf32>
    %102 = vector.extract_strided_slice %97 {offsets = [0, 96], sizes = [8, 32], strides = [1, 1]} : vector<8x128xf32> to vector<8x32xf32>
    %103 = arith.mulf %100, %56 : vector<8x32xf32>
    %104 = arith.mulf %99, %101 : vector<8x32xf32>
    %105 = arith.addf %103, %104 : vector<8x32xf32>
    %106 = math.tanh %105 : vector<8x32xf32>
    %107 = arith.mulf %102, %106 : vector<8x32xf32>
    %108 = arith.index_cast %62 : i32 to index
    %c0_37 = arith.constant 0 : index
    %109 = vector.load %arg15[%108, %c0_37] : memref<64x32xf32, #tpu.memory_space<vmem>>, vector<8x32xf32>
    tpu.vector_store %arg15[%108, %c0_37], %107 {strides = array<i32>} : memref<64x32xf32, #tpu.memory_space<vmem>>, vector<8x32xf32>,
    %c2_i32 = arith.constant 2 : i32
    %c8_i32_38 = arith.constant 8 : i32
    %110 = arith.muli %c2_i32, %c8_i32_38 : i32
    %111 = tpu.assume_multiple %110, 8 : i32
    %112 = arith.index_cast %111 : i32 to index
    %c0_39 = arith.constant 0 : index
    %113 = vector.load %arg14[%112, %c0_39] : memref<64x128xf32, #tpu.memory_space<vmem>>, vector<8x128xf32>
    %114 = arith.truncf %84 : vector<8x32xf32> to vector<8x32xbf16>
    %c0_40 = arith.constant 0 : index
    %c0_41 = arith.constant 0 : index
    %115 = vector.load %arg3[%c0_40, %c0_41] : memref<32x128xbf16, #tpu.memory_space<vmem>>, vector<32x128xbf16>
    %cst_42 = arith.constant dense<0.000000e+00> : vector<8x128xf32>
    %116 = tpu.matmul %114, %115, %cst_42 {dimension_numbers = #tpu.dot_dimension_numbers<[1], [0], [0], [1], [0, 0, 1, 1], [], []>} : vector<8x32xbf16>, vector<32x128xbf16>, vector<8x128xf32> -> vector<8x128xf32>
    %117 = arith.addf %113, %116 : vector<8x128xf32>
    %118 = arith.addf %117, %2 : vector<8x128xf32>
    %119 = arith.negf %118 : vector<8x128xf32>
    %120 = math.exp %119 : vector<8x128xf32>
    %cst_43 = arith.constant 1.000000e+00 : f32
    %121 = vector.broadcast %cst_43 : f32 to vector<8x128xf32>
    %122 = arith.addf %121, %120 : vector<8x128xf32>
    %123 = arith.divf %121, %122 : vector<8x128xf32>
    %124 = math.tanh %118 : vector<8x128xf32>
    %125 = vector.extract_strided_slice %123 {offsets = [0, 0], sizes = [8, 32], strides = [1, 1]} : vector<8x128xf32> to vector<8x32xf32>
    %126 = vector.extract_strided_slice %123 {offsets = [0, 32], sizes = [8, 32], strides = [1, 1]} : vector<8x128xf32> to vector<8x32xf32>
    %127 = vector.extract_strided_slice %124 {offsets = [0, 64], sizes = [8, 32], strides = [1, 1]} : vector<8x128xf32> to vector<8x32xf32>
    %128 = vector.extract_strided_slice %123 {offsets = [0, 96], sizes = [8, 32], strides = [1, 1]} : vector<8x128xf32> to vector<8x32xf32>
    %129 = arith.mulf %126, %82 : vector<8x32xf32>
    %130 = arith.mulf %125, %127 : vector<8x32xf32>
    %131 = arith.addf %129, %130 : vector<8x32xf32>
    %132 = math.tanh %131 : vector<8x32xf32>
    %133 = arith.mulf %128, %132 : vector<8x32xf32>
    %134 = arith.truncf %133 : vector<8x32xf32> to vector<8x32xbf16>
    %c0_44 = arith.constant 0 : index
    %c0_45 = arith.constant 0 : index
    %135 = vector.load %arg4[%c0_44, %c0_45] : memref<32x128xbf16, #tpu.memory_space<vmem>>, vector<32x128xbf16>
    %cst_46 = arith.constant dense<0.000000e+00> : vector<8x128xf32>
    %136 = tpu.matmul %134, %135, %cst_46 {dimension_numbers = #tpu.dot_dimension_numbers<[1], [0], [0], [1], [0, 0, 1, 1], [], []>} : vector<8x32xbf16>, vector<32x128xbf16>, vector<8x128xf32> -> vector<8x128xf32>
    %137 = arith.truncf %107 : vector<8x32xf32> to vector<8x32xbf16>
    %c0_47 = arith.constant 0 : index
    %c0_48 = arith.constant 0 : index
    %138 = vector.load %arg5[%c0_47, %c0_48] : memref<32x128xbf16, #tpu.memory_space<vmem>>, vector<32x128xbf16>
    %cst_49 = arith.constant dense<0.000000e+00> : vector<8x128xf32>
    %139 = tpu.matmul %137, %138, %cst_49 {dimension_numbers = #tpu.dot_dimension_numbers<[1], [0], [0], [1], [0, 0, 1, 1], [], []>} : vector<8x32xbf16>, vector<32x128xbf16>, vector<8x128xf32> -> vector<8x128xf32>
    %140 = arith.addf %136, %139 : vector<8x128xf32>
    %141 = arith.addf %140, %5 : vector<8x128xf32>
    %142 = arith.negf %141 : vector<8x128xf32>
    %143 = math.exp %142 : vector<8x128xf32>
    %cst_50 = arith.constant 1.000000e+00 : f32
    %144 = vector.broadcast %cst_50 : f32 to vector<8x128xf32>
    %145 = arith.addf %144, %143 : vector<8x128xf32>
    %146 = arith.divf %144, %145 : vector<8x128xf32>
    %147 = math.tanh %141 : vector<8x128xf32>
    %148 = vector.extract_strided_slice %146 {offsets = [0, 0], sizes = [8, 32], strides = [1, 1]} : vector<8x128xf32> to vector<8x32xf32>
    %149 = vector.extract_strided_slice %146 {offsets = [0, 32], sizes = [8, 32], strides = [1, 1]} : vector<8x128xf32> to vector<8x32xf32>
    %150 = vector.extract_strided_slice %147 {offsets = [0, 64], sizes = [8, 32], strides = [1, 1]} : vector<8x128xf32> to vector<8x32xf32>
    %151 = vector.extract_strided_slice %146 {offsets = [0, 96], sizes = [8, 32], strides = [1, 1]} : vector<8x128xf32> to vector<8x32xf32>
    %152 = arith.mulf %149, %105 : vector<8x32xf32>
    %153 = arith.mulf %148, %150 : vector<8x32xf32>
    %154 = arith.addf %152, %153 : vector<8x32xf32>
    %155 = math.tanh %154 : vector<8x32xf32>
    %156 = arith.mulf %151, %155 : vector<8x32xf32>
    %157 = arith.index_cast %111 : i32 to index
    %c0_51 = arith.constant 0 : index
    %158 = vector.load %arg15[%157, %c0_51] : memref<64x32xf32, #tpu.memory_space<vmem>>, vector<8x32xf32>
    tpu.vector_store %arg15[%157, %c0_51], %156 {strides = array<i32>} : memref<64x32xf32, #tpu.memory_space<vmem>>, vector<8x32xf32>,
    %c3_i32 = arith.constant 3 : i32
    %c8_i32_52 = arith.constant 8 : i32
    %159 = arith.muli %c3_i32, %c8_i32_52 : i32
    %160 = tpu.assume_multiple %159, 8 : i32
    %161 = arith.index_cast %160 : i32 to index
    %c0_53 = arith.constant 0 : index
    %162 = vector.load %arg14[%161, %c0_53] : memref<64x128xf32, #tpu.memory_space<vmem>>, vector<8x128xf32>
    %163 = arith.truncf %133 : vector<8x32xf32> to vector<8x32xbf16>
    %c0_54 = arith.constant 0 : index
    %c0_55 = arith.constant 0 : index
    %164 = vector.load %arg3[%c0_54, %c0_55] : memref<32x128xbf16, #tpu.memory_space<vmem>>, vector<32x128xbf16>
    %cst_56 = arith.constant dense<0.000000e+00> : vector<8x128xf32>
    %165 = tpu.matmul %163, %164, %cst_56 {dimension_numbers = #tpu.dot_dimension_numbers<[1], [0], [0], [1], [0, 0, 1, 1], [], []>} : vector<8x32xbf16>, vector<32x128xbf16>, vector<8x128xf32> -> vector<8x128xf32>
    %166 = arith.addf %162, %165 : vector<8x128xf32>
    %167 = arith.addf %166, %2 : vector<8x128xf32>
    %168 = arith.negf %167 : vector<8x128xf32>
    %169 = math.exp %168 : vector<8x128xf32>
    %cst_57 = arith.constant 1.000000e+00 : f32
    %170 = vector.broadcast %cst_57 : f32 to vector<8x128xf32>
    %171 = arith.addf %170, %169 : vector<8x128xf32>
    %172 = arith.divf %170, %171 : vector<8x128xf32>
    %173 = math.tanh %167 : vector<8x128xf32>
    %174 = vector.extract_strided_slice %172 {offsets = [0, 0], sizes = [8, 32], strides = [1, 1]} : vector<8x128xf32> to vector<8x32xf32>
    %175 = vector.extract_strided_slice %172 {offsets = [0, 32], sizes = [8, 32], strides = [1, 1]} : vector<8x128xf32> to vector<8x32xf32>
    %176 = vector.extract_strided_slice %173 {offsets = [0, 64], sizes = [8, 32], strides = [1, 1]} : vector<8x128xf32> to vector<8x32xf32>
    %177 = vector.extract_strided_slice %172 {offsets = [0, 96], sizes = [8, 32], strides = [1, 1]} : vector<8x128xf32> to vector<8x32xf32>
    %178 = arith.mulf %175, %131 : vector<8x32xf32>
    %179 = arith.mulf %174, %176 : vector<8x32xf32>
    %180 = arith.addf %178, %179 : vector<8x32xf32>
    %181 = math.tanh %180 : vector<8x32xf32>
    %182 = arith.mulf %177, %181 : vector<8x32xf32>
    %183 = arith.truncf %182 : vector<8x32xf32> to vector<8x32xbf16>
    %c0_58 = arith.constant 0 : index
    %c0_59 = arith.constant 0 : index
    %184 = vector.load %arg4[%c0_58, %c0_59] : memref<32x128xbf16, #tpu.memory_space<vmem>>, vector<32x128xbf16>
    %cst_60 = arith.constant dense<0.000000e+00> : vector<8x128xf32>
    %185 = tpu.matmul %183, %184, %cst_60 {dimension_numbers = #tpu.dot_dimension_numbers<[1], [0], [0], [1], [0, 0, 1, 1], [], []>} : vector<8x32xbf16>, vector<32x128xbf16>, vector<8x128xf32> -> vector<8x128xf32>
    %186 = arith.truncf %156 : vector<8x32xf32> to vector<8x32xbf16>
    %c0_61 = arith.constant 0 : index
    %c0_62 = arith.constant 0 : index
    %187 = vector.load %arg5[%c0_61, %c0_62] : memref<32x128xbf16, #tpu.memory_space<vmem>>, vector<32x128xbf16>
    %cst_63 = arith.constant dense<0.000000e+00> : vector<8x128xf32>
    %188 = tpu.matmul %186, %187, %cst_63 {dimension_numbers = #tpu.dot_dimension_numbers<[1], [0], [0], [1], [0, 0, 1, 1], [], []>} : vector<8x32xbf16>, vector<32x128xbf16>, vector<8x128xf32> -> vector<8x128xf32>
    %189 = arith.addf %185, %188 : vector<8x128xf32>
    %190 = arith.addf %189, %5 : vector<8x128xf32>
    %191 = arith.negf %190 : vector<8x128xf32>
    %192 = math.exp %191 : vector<8x128xf32>
    %cst_64 = arith.constant 1.000000e+00 : f32
    %193 = vector.broadcast %cst_64 : f32 to vector<8x128xf32>
    %194 = arith.addf %193, %192 : vector<8x128xf32>
    %195 = arith.divf %193, %194 : vector<8x128xf32>
    %196 = math.tanh %190 : vector<8x128xf32>
    %197 = vector.extract_strided_slice %195 {offsets = [0, 0], sizes = [8, 32], strides = [1, 1]} : vector<8x128xf32> to vector<8x32xf32>
    %198 = vector.extract_strided_slice %195 {offsets = [0, 32], sizes = [8, 32], strides = [1, 1]} : vector<8x128xf32> to vector<8x32xf32>
    %199 = vector.extract_strided_slice %196 {offsets = [0, 64], sizes = [8, 32], strides = [1, 1]} : vector<8x128xf32> to vector<8x32xf32>
    %200 = vector.extract_strided_slice %195 {offsets = [0, 96], sizes = [8, 32], strides = [1, 1]} : vector<8x128xf32> to vector<8x32xf32>
    %201 = arith.mulf %198, %154 : vector<8x32xf32>
    %202 = arith.mulf %197, %199 : vector<8x32xf32>
    %203 = arith.addf %201, %202 : vector<8x32xf32>
    %204 = math.tanh %203 : vector<8x32xf32>
    %205 = arith.mulf %200, %204 : vector<8x32xf32>
    %206 = arith.index_cast %160 : i32 to index
    %c0_65 = arith.constant 0 : index
    %207 = vector.load %arg15[%206, %c0_65] : memref<64x32xf32, #tpu.memory_space<vmem>>, vector<8x32xf32>
    tpu.vector_store %arg15[%206, %c0_65], %205 {strides = array<i32>} : memref<64x32xf32, #tpu.memory_space<vmem>>, vector<8x32xf32>,
    %c4_i32 = arith.constant 4 : i32
    %c8_i32_66 = arith.constant 8 : i32
    %208 = arith.muli %c4_i32, %c8_i32_66 : i32
    %209 = tpu.assume_multiple %208, 8 : i32
    %210 = arith.index_cast %209 : i32 to index
    %c0_67 = arith.constant 0 : index
    %211 = vector.load %arg14[%210, %c0_67] : memref<64x128xf32, #tpu.memory_space<vmem>>, vector<8x128xf32>
    %212 = arith.truncf %182 : vector<8x32xf32> to vector<8x32xbf16>
    %c0_68 = arith.constant 0 : index
    %c0_69 = arith.constant 0 : index
    %213 = vector.load %arg3[%c0_68, %c0_69] : memref<32x128xbf16, #tpu.memory_space<vmem>>, vector<32x128xbf16>
    %cst_70 = arith.constant dense<0.000000e+00> : vector<8x128xf32>
    %214 = tpu.matmul %212, %213, %cst_70 {dimension_numbers = #tpu.dot_dimension_numbers<[1], [0], [0], [1], [0, 0, 1, 1], [], []>} : vector<8x32xbf16>, vector<32x128xbf16>, vector<8x128xf32> -> vector<8x128xf32>
    %215 = arith.addf %211, %214 : vector<8x128xf32>
    %216 = arith.addf %215, %2 : vector<8x128xf32>
    %217 = arith.negf %216 : vector<8x128xf32>
    %218 = math.exp %217 : vector<8x128xf32>
    %cst_71 = arith.constant 1.000000e+00 : f32
    %219 = vector.broadcast %cst_71 : f32 to vector<8x128xf32>
    %220 = arith.addf %219, %218 : vector<8x128xf32>
    %221 = arith.divf %219, %220 : vector<8x128xf32>
    %222 = math.tanh %216 : vector<8x128xf32>
    %223 = vector.extract_strided_slice %221 {offsets = [0, 0], sizes = [8, 32], strides = [1, 1]} : vector<8x128xf32> to vector<8x32xf32>
    %224 = vector.extract_strided_slice %221 {offsets = [0, 32], sizes = [8, 32], strides = [1, 1]} : vector<8x128xf32> to vector<8x32xf32>
    %225 = vector.extract_strided_slice %222 {offsets = [0, 64], sizes = [8, 32], strides = [1, 1]} : vector<8x128xf32> to vector<8x32xf32>
    %226 = vector.extract_strided_slice %221 {offsets = [0, 96], sizes = [8, 32], strides = [1, 1]} : vector<8x128xf32> to vector<8x32xf32>
    %227 = arith.mulf %224, %180 : vector<8x32xf32>
    %228 = arith.mulf %223, %225 : vector<8x32xf32>
    %229 = arith.addf %227, %228 : vector<8x32xf32>
    %230 = math.tanh %229 : vector<8x32xf32>
    %231 = arith.mulf %226, %230 : vector<8x32xf32>
    %232 = arith.truncf %231 : vector<8x32xf32> to vector<8x32xbf16>
    %c0_72 = arith.constant 0 : index
    %c0_73 = arith.constant 0 : index
    %233 = vector.load %arg4[%c0_72, %c0_73] : memref<32x128xbf16, #tpu.memory_space<vmem>>, vector<32x128xbf16>
    %cst_74 = arith.constant dense<0.000000e+00> : vector<8x128xf32>
    %234 = tpu.matmul %232, %233, %cst_74 {dimension_numbers = #tpu.dot_dimension_numbers<[1], [0], [0], [1], [0, 0, 1, 1], [], []>} : vector<8x32xbf16>, vector<32x128xbf16>, vector<8x128xf32> -> vector<8x128xf32>
    %235 = arith.truncf %205 : vector<8x32xf32> to vector<8x32xbf16>
    %c0_75 = arith.constant 0 : index
    %c0_76 = arith.constant 0 : index
    %236 = vector.load %arg5[%c0_75, %c0_76] : memref<32x128xbf16, #tpu.memory_space<vmem>>, vector<32x128xbf16>
    %cst_77 = arith.constant dense<0.000000e+00> : vector<8x128xf32>
    %237 = tpu.matmul %235, %236, %cst_77 {dimension_numbers = #tpu.dot_dimension_numbers<[1], [0], [0], [1], [0, 0, 1, 1], [], []>} : vector<8x32xbf16>, vector<32x128xbf16>, vector<8x128xf32> -> vector<8x128xf32>
    %238 = arith.addf %234, %237 : vector<8x128xf32>
    %239 = arith.addf %238, %5 : vector<8x128xf32>
    %240 = arith.negf %239 : vector<8x128xf32>
    %241 = math.exp %240 : vector<8x128xf32>
    %cst_78 = arith.constant 1.000000e+00 : f32
    %242 = vector.broadcast %cst_78 : f32 to vector<8x128xf32>
    %243 = arith.addf %242, %241 : vector<8x128xf32>
    %244 = arith.divf %242, %243 : vector<8x128xf32>
    %245 = math.tanh %239 : vector<8x128xf32>
    %246 = vector.extract_strided_slice %244 {offsets = [0, 0], sizes = [8, 32], strides = [1, 1]} : vector<8x128xf32> to vector<8x32xf32>
    %247 = vector.extract_strided_slice %244 {offsets = [0, 32], sizes = [8, 32], strides = [1, 1]} : vector<8x128xf32> to vector<8x32xf32>
    %248 = vector.extract_strided_slice %245 {offsets = [0, 64], sizes = [8, 32], strides = [1, 1]} : vector<8x128xf32> to vector<8x32xf32>
    %249 = vector.extract_strided_slice %244 {offsets = [0, 96], sizes = [8, 32], strides = [1, 1]} : vector<8x128xf32> to vector<8x32xf32>
    %250 = arith.mulf %247, %203 : vector<8x32xf32>
    %251 = arith.mulf %246, %248 : vector<8x32xf32>
    %252 = arith.addf %250, %251 : vector<8x32xf32>
    %253 = math.tanh %252 : vector<8x32xf32>
    %254 = arith.mulf %249, %253 : vector<8x32xf32>
    %255 = arith.index_cast %209 : i32 to index
    %c0_79 = arith.constant 0 : index
    %256 = vector.load %arg15[%255, %c0_79] : memref<64x32xf32, #tpu.memory_space<vmem>>, vector<8x32xf32>
    tpu.vector_store %arg15[%255, %c0_79], %254 {strides = array<i32>} : memref<64x32xf32, #tpu.memory_space<vmem>>, vector<8x32xf32>,
    %c5_i32 = arith.constant 5 : i32
    %c8_i32_80 = arith.constant 8 : i32
    %257 = arith.muli %c5_i32, %c8_i32_80 : i32
    %258 = tpu.assume_multiple %257, 8 : i32
    %259 = arith.index_cast %258 : i32 to index
    %c0_81 = arith.constant 0 : index
    %260 = vector.load %arg14[%259, %c0_81] : memref<64x128xf32, #tpu.memory_space<vmem>>, vector<8x128xf32>
    %261 = arith.truncf %231 : vector<8x32xf32> to vector<8x32xbf16>
    %c0_82 = arith.constant 0 : index
    %c0_83 = arith.constant 0 : index
    %262 = vector.load %arg3[%c0_82, %c0_83] : memref<32x128xbf16, #tpu.memory_space<vmem>>, vector<32x128xbf16>
    %cst_84 = arith.constant dense<0.000000e+00> : vector<8x128xf32>
    %263 = tpu.matmul %261, %262, %cst_84 {dimension_numbers = #tpu.dot_dimension_numbers<[1], [0], [0], [1], [0, 0, 1, 1], [], []>} : vector<8x32xbf16>, vector<32x128xbf16>, vector<8x128xf32> -> vector<8x128xf32>
    %264 = arith.addf %260, %263 : vector<8x128xf32>
    %265 = arith.addf %264, %2 : vector<8x128xf32>
    %266 = arith.negf %265 : vector<8x128xf32>
    %267 = math.exp %266 : vector<8x128xf32>
    %cst_85 = arith.constant 1.000000e+00 : f32
    %268 = vector.broadcast %cst_85 : f32 to vector<8x128xf32>
    %269 = arith.addf %268, %267 : vector<8x128xf32>
    %270 = arith.divf %268, %269 : vector<8x128xf32>
    %271 = math.tanh %265 : vector<8x128xf32>
    %272 = vector.extract_strided_slice %270 {offsets = [0, 0], sizes = [8, 32], strides = [1, 1]} : vector<8x128xf32> to vector<8x32xf32>
    %273 = vector.extract_strided_slice %270 {offsets = [0, 32], sizes = [8, 32], strides = [1, 1]} : vector<8x128xf32> to vector<8x32xf32>
    %274 = vector.extract_strided_slice %271 {offsets = [0, 64], sizes = [8, 32], strides = [1, 1]} : vector<8x128xf32> to vector<8x32xf32>
    %275 = vector.extract_strided_slice %270 {offsets = [0, 96], sizes = [8, 32], strides = [1, 1]} : vector<8x128xf32> to vector<8x32xf32>
    %276 = arith.mulf %273, %229 : vector<8x32xf32>
    %277 = arith.mulf %272, %274 : vector<8x32xf32>
    %278 = arith.addf %276, %277 : vector<8x32xf32>
    %279 = math.tanh %278 : vector<8x32xf32>
    %280 = arith.mulf %275, %279 : vector<8x32xf32>
    %281 = arith.truncf %280 : vector<8x32xf32> to vector<8x32xbf16>
    %c0_86 = arith.constant 0 : index
    %c0_87 = arith.constant 0 : index
    %282 = vector.load %arg4[%c0_86, %c0_87] : memref<32x128xbf16, #tpu.memory_space<vmem>>, vector<32x128xbf16>
    %cst_88 = arith.constant dense<0.000000e+00> : vector<8x128xf32>
    %283 = tpu.matmul %281, %282, %cst_88 {dimension_numbers = #tpu.dot_dimension_numbers<[1], [0], [0], [1], [0, 0, 1, 1], [], []>} : vector<8x32xbf16>, vector<32x128xbf16>, vector<8x128xf32> -> vector<8x128xf32>
    %284 = arith.truncf %254 : vector<8x32xf32> to vector<8x32xbf16>
    %c0_89 = arith.constant 0 : index
    %c0_90 = arith.constant 0 : index
    %285 = vector.load %arg5[%c0_89, %c0_90] : memref<32x128xbf16, #tpu.memory_space<vmem>>, vector<32x128xbf16>
    %cst_91 = arith.constant dense<0.000000e+00> : vector<8x128xf32>
    %286 = tpu.matmul %284, %285, %cst_91 {dimension_numbers = #tpu.dot_dimension_numbers<[1], [0], [0], [1], [0, 0, 1, 1], [], []>} : vector<8x32xbf16>, vector<32x128xbf16>, vector<8x128xf32> -> vector<8x128xf32>
    %287 = arith.addf %283, %286 : vector<8x128xf32>
    %288 = arith.addf %287, %5 : vector<8x128xf32>
    %289 = arith.negf %288 : vector<8x128xf32>
    %290 = math.exp %289 : vector<8x128xf32>
    %cst_92 = arith.constant 1.000000e+00 : f32
    %291 = vector.broadcast %cst_92 : f32 to vector<8x128xf32>
    %292 = arith.addf %291, %290 : vector<8x128xf32>
    %293 = arith.divf %291, %292 : vector<8x128xf32>
    %294 = math.tanh %288 : vector<8x128xf32>
    %295 = vector.extract_strided_slice %293 {offsets = [0, 0], sizes = [8, 32], strides = [1, 1]} : vector<8x128xf32> to vector<8x32xf32>
    %296 = vector.extract_strided_slice %293 {offsets = [0, 32], sizes = [8, 32], strides = [1, 1]} : vector<8x128xf32> to vector<8x32xf32>
    %297 = vector.extract_strided_slice %294 {offsets = [0, 64], sizes = [8, 32], strides = [1, 1]} : vector<8x128xf32> to vector<8x32xf32>
    %298 = vector.extract_strided_slice %293 {offsets = [0, 96], sizes = [8, 32], strides = [1, 1]} : vector<8x128xf32> to vector<8x32xf32>
    %299 = arith.mulf %296, %252 : vector<8x32xf32>
    %300 = arith.mulf %295, %297 : vector<8x32xf32>
    %301 = arith.addf %299, %300 : vector<8x32xf32>
    %302 = math.tanh %301 : vector<8x32xf32>
    %303 = arith.mulf %298, %302 : vector<8x32xf32>
    %304 = arith.index_cast %258 : i32 to index
    %c0_93 = arith.constant 0 : index
    %305 = vector.load %arg15[%304, %c0_93] : memref<64x32xf32, #tpu.memory_space<vmem>>, vector<8x32xf32>
    tpu.vector_store %arg15[%304, %c0_93], %303 {strides = array<i32>} : memref<64x32xf32, #tpu.memory_space<vmem>>, vector<8x32xf32>,
    %c6_i32 = arith.constant 6 : i32
    %c8_i32_94 = arith.constant 8 : i32
    %306 = arith.muli %c6_i32, %c8_i32_94 : i32
    %307 = tpu.assume_multiple %306, 8 : i32
    %308 = arith.index_cast %307 : i32 to index
    %c0_95 = arith.constant 0 : index
    %309 = vector.load %arg14[%308, %c0_95] : memref<64x128xf32, #tpu.memory_space<vmem>>, vector<8x128xf32>
    %310 = arith.truncf %280 : vector<8x32xf32> to vector<8x32xbf16>
    %c0_96 = arith.constant 0 : index
    %c0_97 = arith.constant 0 : index
    %311 = vector.load %arg3[%c0_96, %c0_97] : memref<32x128xbf16, #tpu.memory_space<vmem>>, vector<32x128xbf16>
    %cst_98 = arith.constant dense<0.000000e+00> : vector<8x128xf32>
    %312 = tpu.matmul %310, %311, %cst_98 {dimension_numbers = #tpu.dot_dimension_numbers<[1], [0], [0], [1], [0, 0, 1, 1], [], []>} : vector<8x32xbf16>, vector<32x128xbf16>, vector<8x128xf32> -> vector<8x128xf32>
    %313 = arith.addf %309, %312 : vector<8x128xf32>
    %314 = arith.addf %313, %2 : vector<8x128xf32>
    %315 = arith.negf %314 : vector<8x128xf32>
    %316 = math.exp %315 : vector<8x128xf32>
    %cst_99 = arith.constant 1.000000e+00 : f32
    %317 = vector.broadcast %cst_99 : f32 to vector<8x128xf32>
    %318 = arith.addf %317, %316 : vector<8x128xf32>
    %319 = arith.divf %317, %318 : vector<8x128xf32>
    %320 = math.tanh %314 : vector<8x128xf32>
    %321 = vector.extract_strided_slice %319 {offsets = [0, 0], sizes = [8, 32], strides = [1, 1]} : vector<8x128xf32> to vector<8x32xf32>
    %322 = vector.extract_strided_slice %319 {offsets = [0, 32], sizes = [8, 32], strides = [1, 1]} : vector<8x128xf32> to vector<8x32xf32>
    %323 = vector.extract_strided_slice %320 {offsets = [0, 64], sizes = [8, 32], strides = [1, 1]} : vector<8x128xf32> to vector<8x32xf32>
    %324 = vector.extract_strided_slice %319 {offsets = [0, 96], sizes = [8, 32], strides = [1, 1]} : vector<8x128xf32> to vector<8x32xf32>
    %325 = arith.mulf %322, %278 : vector<8x32xf32>
    %326 = arith.mulf %321, %323 : vector<8x32xf32>
    %327 = arith.addf %325, %326 : vector<8x32xf32>
    %328 = math.tanh %327 : vector<8x32xf32>
    %329 = arith.mulf %324, %328 : vector<8x32xf32>
    %330 = arith.truncf %329 : vector<8x32xf32> to vector<8x32xbf16>
    %c0_100 = arith.constant 0 : index
    %c0_101 = arith.constant 0 : index
    %331 = vector.load %arg4[%c0_100, %c0_101] : memref<32x128xbf16, #tpu.memory_space<vmem>>, vector<32x128xbf16>
    %cst_102 = arith.constant dense<0.000000e+00> : vector<8x128xf32>
    %332 = tpu.matmul %330, %331, %cst_102 {dimension_numbers = #tpu.dot_dimension_numbers<[1], [0], [0], [1], [0, 0, 1, 1], [], []>} : vector<8x32xbf16>, vector<32x128xbf16>, vector<8x128xf32> -> vector<8x128xf32>
    %333 = arith.truncf %303 : vector<8x32xf32> to vector<8x32xbf16>
    %c0_103 = arith.constant 0 : index
    %c0_104 = arith.constant 0 : index
    %334 = vector.load %arg5[%c0_103, %c0_104] : memref<32x128xbf16, #tpu.memory_space<vmem>>, vector<32x128xbf16>
    %cst_105 = arith.constant dense<0.000000e+00> : vector<8x128xf32>
    %335 = tpu.matmul %333, %334, %cst_105 {dimension_numbers = #tpu.dot_dimension_numbers<[1], [0], [0], [1], [0, 0, 1, 1], [], []>} : vector<8x32xbf16>, vector<32x128xbf16>, vector<8x128xf32> -> vector<8x128xf32>
    %336 = arith.addf %332, %335 : vector<8x128xf32>
    %337 = arith.addf %336, %5 : vector<8x128xf32>
    %338 = arith.negf %337 : vector<8x128xf32>
    %339 = math.exp %338 : vector<8x128xf32>
    %cst_106 = arith.constant 1.000000e+00 : f32
    %340 = vector.broadcast %cst_106 : f32 to vector<8x128xf32>
    %341 = arith.addf %340, %339 : vector<8x128xf32>
    %342 = arith.divf %340, %341 : vector<8x128xf32>
    %343 = math.tanh %337 : vector<8x128xf32>
    %344 = vector.extract_strided_slice %342 {offsets = [0, 0], sizes = [8, 32], strides = [1, 1]} : vector<8x128xf32> to vector<8x32xf32>
    %345 = vector.extract_strided_slice %342 {offsets = [0, 32], sizes = [8, 32], strides = [1, 1]} : vector<8x128xf32> to vector<8x32xf32>
    %346 = vector.extract_strided_slice %343 {offsets = [0, 64], sizes = [8, 32], strides = [1, 1]} : vector<8x128xf32> to vector<8x32xf32>
    %347 = vector.extract_strided_slice %342 {offsets = [0, 96], sizes = [8, 32], strides = [1, 1]} : vector<8x128xf32> to vector<8x32xf32>
    %348 = arith.mulf %345, %301 : vector<8x32xf32>
    %349 = arith.mulf %344, %346 : vector<8x32xf32>
    %350 = arith.addf %348, %349 : vector<8x32xf32>
    %351 = math.tanh %350 : vector<8x32xf32>
    %352 = arith.mulf %347, %351 : vector<8x32xf32>
    %353 = arith.index_cast %307 : i32 to index
    %c0_107 = arith.constant 0 : index
    %354 = vector.load %arg15[%353, %c0_107] : memref<64x32xf32, #tpu.memory_space<vmem>>, vector<8x32xf32>
    tpu.vector_store %arg15[%353, %c0_107], %352 {strides = array<i32>} : memref<64x32xf32, #tpu.memory_space<vmem>>, vector<8x32xf32>,
    %c7_i32 = arith.constant 7 : i32
    %c8_i32_108 = arith.constant 8 : i32
    %355 = arith.muli %c7_i32, %c8_i32_108 : i32
    %356 = tpu.assume_multiple %355, 8 : i32
    %357 = arith.index_cast %356 : i32 to index
    %c0_109 = arith.constant 0 : index
    %358 = vector.load %arg14[%357, %c0_109] : memref<64x128xf32, #tpu.memory_space<vmem>>, vector<8x128xf32>
    %359 = arith.truncf %329 : vector<8x32xf32> to vector<8x32xbf16>
    %c0_110 = arith.constant 0 : index
    %c0_111 = arith.constant 0 : index
    %360 = vector.load %arg3[%c0_110, %c0_111] : memref<32x128xbf16, #tpu.memory_space<vmem>>, vector<32x128xbf16>
    %cst_112 = arith.constant dense<0.000000e+00> : vector<8x128xf32>
    %361 = tpu.matmul %359, %360, %cst_112 {dimension_numbers = #tpu.dot_dimension_numbers<[1], [0], [0], [1], [0, 0, 1, 1], [], []>} : vector<8x32xbf16>, vector<32x128xbf16>, vector<8x128xf32> -> vector<8x128xf32>
    %362 = arith.addf %358, %361 : vector<8x128xf32>
    %363 = arith.addf %362, %2 : vector<8x128xf32>
    %364 = arith.negf %363 : vector<8x128xf32>
    %365 = math.exp %364 : vector<8x128xf32>
    %cst_113 = arith.constant 1.000000e+00 : f32
    %366 = vector.broadcast %cst_113 : f32 to vector<8x128xf32>
    %367 = arith.addf %366, %365 : vector<8x128xf32>
    %368 = arith.divf %366, %367 : vector<8x128xf32>
    %369 = math.tanh %363 : vector<8x128xf32>
    %370 = vector.extract_strided_slice %368 {offsets = [0, 0], sizes = [8, 32], strides = [1, 1]} : vector<8x128xf32> to vector<8x32xf32>
    %371 = vector.extract_strided_slice %368 {offsets = [0, 32], sizes = [8, 32], strides = [1, 1]} : vector<8x128xf32> to vector<8x32xf32>
    %372 = vector.extract_strided_slice %369 {offsets = [0, 64], sizes = [8, 32], strides = [1, 1]} : vector<8x128xf32> to vector<8x32xf32>
    %373 = vector.extract_strided_slice %368 {offsets = [0, 96], sizes = [8, 32], strides = [1, 1]} : vector<8x128xf32> to vector<8x32xf32>
    %374 = arith.mulf %371, %327 : vector<8x32xf32>
    %375 = arith.mulf %370, %372 : vector<8x32xf32>
    %376 = arith.addf %374, %375 : vector<8x32xf32>
    %377 = math.tanh %376 : vector<8x32xf32>
    %378 = arith.mulf %373, %377 : vector<8x32xf32>
    %379 = arith.truncf %378 : vector<8x32xf32> to vector<8x32xbf16>
    %c0_114 = arith.constant 0 : index
    %c0_115 = arith.constant 0 : index
    %380 = vector.load %arg4[%c0_114, %c0_115] : memref<32x128xbf16, #tpu.memory_space<vmem>>, vector<32x128xbf16>
    %cst_116 = arith.constant dense<0.000000e+00> : vector<8x128xf32>
    %381 = tpu.matmul %379, %380, %cst_116 {dimension_numbers = #tpu.dot_dimension_numbers<[1], [0], [0], [1], [0, 0, 1, 1], [], []>} : vector<8x32xbf16>, vector<32x128xbf16>, vector<8x128xf32> -> vector<8x128xf32>
    %382 = arith.truncf %352 : vector<8x32xf32> to vector<8x32xbf16>
    %c0_117 = arith.constant 0 : index
    %c0_118 = arith.constant 0 : index
    %383 = vector.load %arg5[%c0_117, %c0_118] : memref<32x128xbf16, #tpu.memory_space<vmem>>, vector<32x128xbf16>
    %cst_119 = arith.constant dense<0.000000e+00> : vector<8x128xf32>
    %384 = tpu.matmul %382, %383, %cst_119 {dimension_numbers = #tpu.dot_dimension_numbers<[1], [0], [0], [1], [0, 0, 1, 1], [], []>} : vector<8x32xbf16>, vector<32x128xbf16>, vector<8x128xf32> -> vector<8x128xf32>
    %385 = arith.addf %381, %384 : vector<8x128xf32>
    %386 = arith.addf %385, %5 : vector<8x128xf32>
    %387 = arith.negf %386 : vector<8x128xf32>
    %388 = math.exp %387 : vector<8x128xf32>
    %cst_120 = arith.constant 1.000000e+00 : f32
    %389 = vector.broadcast %cst_120 : f32 to vector<8x128xf32>
    %390 = arith.addf %389, %388 : vector<8x128xf32>
    %391 = arith.divf %389, %390 : vector<8x128xf32>
    %392 = math.tanh %386 : vector<8x128xf32>
    %393 = vector.extract_strided_slice %391 {offsets = [0, 0], sizes = [8, 32], strides = [1, 1]} : vector<8x128xf32> to vector<8x32xf32>
    %394 = vector.extract_strided_slice %391 {offsets = [0, 32], sizes = [8, 32], strides = [1, 1]} : vector<8x128xf32> to vector<8x32xf32>
    %395 = vector.extract_strided_slice %392 {offsets = [0, 64], sizes = [8, 32], strides = [1, 1]} : vector<8x128xf32> to vector<8x32xf32>
    %396 = vector.extract_strided_slice %391 {offsets = [0, 96], sizes = [8, 32], strides = [1, 1]} : vector<8x128xf32> to vector<8x32xf32>
    %397 = arith.mulf %394, %350 : vector<8x32xf32>
    %398 = arith.mulf %393, %395 : vector<8x32xf32>
    %399 = arith.addf %397, %398 : vector<8x32xf32>
    %400 = math.tanh %399 : vector<8x32xf32>
    %401 = arith.mulf %396, %400 : vector<8x32xf32>
    %402 = arith.index_cast %356 : i32 to index
    %c0_121 = arith.constant 0 : index
    %403 = vector.load %arg15[%402, %c0_121] : memref<64x32xf32, #tpu.memory_space<vmem>>, vector<8x32xf32>
    tpu.vector_store %arg15[%402, %c0_121], %401 {strides = array<i32>} : memref<64x32xf32, #tpu.memory_space<vmem>>, vector<8x32xf32>,
    %c8_i32_122 = arith.constant 8 : i32
    %404 = arith.truncf %401 : vector<8x32xf32> to vector<8x32xbf16>
    %c0_123 = arith.constant 0 : index
    %c0_124 = arith.constant 0 : index
    %405 = vector.load %arg8[%c0_123, %c0_124] : memref<32x128xbf16, #tpu.memory_space<vmem>>, vector<32x128xbf16>
    %cst_125 = arith.constant dense<0.000000e+00> : vector<8x128xf32>
    %406 = tpu.matmul %404, %405, %cst_125 {dimension_numbers = #tpu.dot_dimension_numbers<[1], [0], [0], [1], [0, 0, 1, 1], [], []>} : vector<8x32xbf16>, vector<32x128xbf16>, vector<8x128xf32> -> vector<8x128xf32>
    %c0_126 = arith.constant 0 : index
    %c0_127 = arith.constant 0 : index
    %407 = vector.load %arg9[%c0_126, %c0_127] : memref<1x128xf32, #tpu.memory_space<vmem>>, vector<1x128xf32>
    %408 = vector.broadcast %407 : vector<1x128xf32> to vector<8x128xf32>
    %409 = arith.addf %406, %408 : vector<8x128xf32>
    %c0_128 = arith.constant 0 : index
    %c0_129 = arith.constant 0 : index
    %c0_130 = arith.constant 0 : index
    %410 = vector.load %arg12[%c0_128, %c0_129, %c0_130] : memref<1x8x128xf32, #tpu.memory_space<vmem>>, vector<1x8x128xf32>
    %411 = vector.shape_cast %410 : vector<1x8x128xf32> to vector<8x128xf32>
    %412 = vector.shape_cast %409 : vector<8x128xf32> to vector<1x8x128xf32>
    tpu.vector_store %arg12[%c0_128, %c0_129, %c0_130], %412 {strides = array<i32>} : memref<1x8x128xf32, #tpu.memory_space<vmem>>, vector<1x8x128xf32>,
    %c0_131 = arith.constant 0 : index
    %c0_132 = arith.constant 0 : index
    %413 = vector.load %arg15[%c0_131, %c0_132] : memref<64x32xf32, #tpu.memory_space<vmem>>, vector<64x32xf32>
    %414 = arith.truncf %413 : vector<64x32xf32> to vector<64x32xbf16>
    %c0_133 = arith.constant 0 : index
    %c0_134 = arith.constant 0 : index
    %415 = vector.load %arg10[%c0_133, %c0_134] : memref<32x128xbf16, #tpu.memory_space<vmem>>, vector<32x128xbf16>
    %cst_135 = arith.constant dense<0.000000e+00> : vector<64x128xf32>
    %416 = tpu.matmul %414, %415, %cst_135 {dimension_numbers = #tpu.dot_dimension_numbers<[1], [0], [0], [1], [0, 0, 1, 1], [], []>} : vector<64x32xbf16>, vector<32x128xbf16>, vector<64x128xf32> -> vector<64x128xf32>
    %c0_136 = arith.constant 0 : index
    %c0_137 = arith.constant 0 : index
    %417 = vector.load %arg11[%c0_136, %c0_137] : memref<1x128xf32, #tpu.memory_space<vmem>>, vector<1x128xf32>
    %418 = vector.broadcast %417 : vector<1x128xf32> to vector<64x128xf32>
    %419 = arith.addf %416, %418 : vector<64x128xf32>
    %c0_138 = arith.constant 0 : index
    %c0_139 = arith.constant 0 : index
    %c0_140 = arith.constant 0 : index
    %420 = vector.load %arg13[%c0_138, %c0_139, %c0_140] : memref<1x64x128xf32, #tpu.memory_space<vmem>>, vector<1x64x128xf32>
    %421 = vector.shape_cast %420 : vector<1x64x128xf32> to vector<64x128xf32>
    %422 = vector.shape_cast %419 : vector<64x128xf32> to vector<1x64x128xf32>
    tpu.vector_store %arg13[%c0_138, %c0_139, %c0_140], %422 {strides = array<i32>} : memref<1x64x128xf32, #tpu.memory_space<vmem>>, vector<1x64x128xf32>,
    return
  }
  func.func @transform_0(%arg0: i32) -> (i32, i32, i32) {
    %c0_i32 = arith.constant 0 : i32
    %c0_i32_0 = arith.constant 0 : i32
    %c0_i32_1 = arith.constant 0 : i32
    return %arg0, %c0_i32, %c0_i32_0 : i32, i32, i32
  }
  func.func @transform_1(%arg0: i32) -> (i32, i32) {
    %c0_i32 = arith.constant 0 : i32
    %c0_i32_0 = arith.constant 0 : i32
    %c0_i32_1 = arith.constant 0 : i32
    return %c0_i32, %c0_i32_0 : i32, i32
  }
  func.func @transform_2(%arg0: i32) -> (i32, i32) {
    %c0_i32 = arith.constant 0 : i32
    %c0_i32_0 = arith.constant 0 : i32
    %c0_i32_1 = arith.constant 0 : i32
    return %c0_i32, %c0_i32_0 : i32, i32
  }
  func.func @transform_3(%arg0: i32) -> (i32, i32) {
    %c0_i32 = arith.constant 0 : i32
    %c0_i32_0 = arith.constant 0 : i32
    %c0_i32_1 = arith.constant 0 : i32
    return %c0_i32, %c0_i32_0 : i32, i32
  }
  func.func @transform_4(%arg0: i32) -> (i32, i32) {
    %c0_i32 = arith.constant 0 : i32
    %c0_i32_0 = arith.constant 0 : i32
    %c0_i32_1 = arith.constant 0 : i32
    return %c0_i32, %c0_i32_0 : i32, i32
  }
  func.func @transform_5(%arg0: i32) -> (i32, i32) {
    %c0_i32 = arith.constant 0 : i32
    %c0_i32_0 = arith.constant 0 : i32
    %c0_i32_1 = arith.constant 0 : i32
    return %c0_i32, %c0_i32_0 : i32, i32
  }
  func.func @transform_6(%arg0: i32) -> (i32, i32) {
    %c0_i32 = arith.constant 0 : i32
    %c0_i32_0 = arith.constant 0 : i32
    %c0_i32_1 = arith.constant 0 : i32
    return %c0_i32, %c0_i32_0 : i32, i32
  }
  func.func @transform_7(%arg0: i32) -> (i32, i32) {
    %c0_i32 = arith.constant 0 : i32
    %c0_i32_0 = arith.constant 0 : i32
    %c0_i32_1 = arith.constant 0 : i32
    return %c0_i32, %c0_i32_0 : i32, i32
  }
  func.func @transform_8(%arg0: i32) -> (i32, i32) {
    %c0_i32 = arith.constant 0 : i32
    %c0_i32_0 = arith.constant 0 : i32
    %c0_i32_1 = arith.constant 0 : i32
    return %c0_i32, %c0_i32_0 : i32, i32
  }
  func.func @transform_9(%arg0: i32) -> (i32, i32) {
    %c0_i32 = arith.constant 0 : i32
    %c0_i32_0 = arith.constant 0 : i32
    %c0_i32_1 = arith.constant 0 : i32
    return %c0_i32, %c0_i32_0 : i32, i32
  }
  func.func @transform_10(%arg0: i32) -> (i32, i32) {
    %c0_i32 = arith.constant 0 : i32
    %c0_i32_0 = arith.constant 0 : i32
    %c0_i32_1 = arith.constant 0 : i32
    return %c0_i32, %c0_i32_0 : i32, i32
  }
  func.func @transform_11(%arg0: i32) -> (i32, i32, i32) {
    %c0_i32 = arith.constant 0 : i32
    %c0_i32_0 = arith.constant 0 : i32
    %c0_i32_1 = arith.constant 0 : i32
    return %arg0, %c0_i32, %c0_i32_0 : i32, i32, i32
  }
  func.func @transform_12(%arg0: i32) -> (i32, i32, i32) {
    %c0_i32 = arith.constant 0 : i32
    %c0_i32_0 = arith.constant 0 : i32
    %c0_i32_1 = arith.constant 0 : i32
    return %arg0, %c0_i32, %c0_i32_0 : i32, i32, i32
  }
}

</mosaic_0001>

<bundles_post_ra>
// kernel: sequence_classifier_forward.1
= control target key start
LH: loop header
LB: loop body
LE: loop exit
PB: predicated region body
PF: predicated region fallthrough
CT: control target
= control target key end

     0   :  { %vm91_vm0 = vcmask 1041408   ;;  %vm78_vm1 = vcmask 31744   ;;  %v2211_v5 = vmov 0   ;;  %s2212_s30 = smov 64   ;;  %s2213_s13 = smov 32   ;;  %vm149_vm6 = vcmask 261120   ;;  %s2736_s2 = inlined_call_operand.vmem [shape: bf16[32,128], index: 2, kind: input, shape index: {}]   ;;  %s2737_s1 = inlined_call_operand.vmem [shape: bf16[4,128], index: 1, kind: input, shape index: {}]   ;;  %s2738_s0 = inlined_call_operand.vmem [shape: bf16[1,64,4], index: 0, kind: input, shape index: {}]   ;;  %s2739_s5 = inlined_call_operand.vmem [shape: f32[1,128], index: 5, kind: input, shape index: {}]   ;;  %s2740_s4 = inlined_call_operand.vmem [shape: bf16[32,128], index: 4, kind: input, shape index: {}]   ;;  %s2741_s3 = inlined_call_operand.vmem [shape: bf16[32,128], index: 3, kind: input, shape index: {}]   ;;  %s2742_s6 = inlined_call_operand.vmem [shape: f32[1,128], index: 6, kind: input, shape index: {}]   ;;  %s2743_s9 = inlined_call_operand.vmem [shape: bf16[32,128], index: 9, kind: input, shape index: {}]   ;;  %s2744_s10 = inlined_call_operand.vmem [shape: f32[1,128], index: 10, kind: input, shape index: {}]   ;;  %s2745_s8 = inlined_call_operand.vmem [shape: f32[1,128], index: 8, kind: input, shape index: {}]   ;;  %s2746_s12 = inlined_call_operand.vmem [shape: f32[1,64,128], index: 12, kind: output, shape index: {1}]   ;;  %s2747_s7 = inlined_call_operand.vmem [shape: bf16[32,128], index: 7, kind: input, shape index: {}]   ;;  %s2748_s11 = inlined_call_operand.vmem [shape: f32[1,8,128], index: 11, kind: output, shape index: {0}]  }
   0x1   :  { %v2021_v0 = vld [vmem:[%s2736_s2 + $0x8] sm:$0xff]  ;;  %v57_v1 = vld [vmem:[%s2737_s1] sm:$0x3]  ;;  %v2018_v39 = vld [vmem:[%s2738_s0 + $0x10] sm:$0xff] }
   0x2   :  { %v93_v2 = vsel %vm91_vm0, %v57_v1, 0  ;;  %v2016_v3 = vld [vmem:[%s2738_s0] sm:$0xff]  ;;  %159 = vmatpush.bf16.msra.mxu3 %v2021_v0  ;;  %v2025_v32 = vld [vmem:[%s2740_s4 + $0x8] sm:$0xff]  ;;  %v2019_v43 = vld [vmem:[%s2738_s0 + $0x18] sm:$0xff] }
   0x3   :  { %102 = vmatpush.bf16.msra.mxu0 %v93_v2  ;;  %v2020_v4 = vld [vmem:[%s2736_s2] sm:$0xff]  ;;  %v2017_v33 = vld [vmem:[%s2738_s0 + $0x8] sm:$0xff] }
   0x4   :  { %v2296_v6 = vld [vmem:[%s2739_s5] ss:$0 sm:$0xff]  ;;  %v2023_v35 = vld [vmem:[%s2741_s3 + $0x8] sm:$0xff] }
   0x5   :  { %v2024_v34 = vld [vmem:[%s2740_s4] sm:$0xff]  ;;  %v2027_v36 = vld [vmem:[%s2736_s2 + $0x8] sm:$0xff] }
   0x6   :  { %1761 = vmatmul.msk.bf16.vlgmr.msra.gmra.mxu0 %vm78_vm1, %v2016_v3  ;;  %160 = vmatpush.bf16.msra.mxu3 %v2020_v4  ;;  %v2022_v37 = vld [vmem:[%s2741_s3] sm:$0xff] }
   0x7   :  { %232 = vmatpush.bf16.msrb.mxu0 %v2025_v32  ;;  %337 = vmatpush.bf16.msra.mxu1 %v2027_v36  ;;  %v2026_v38 = vld [vmem:[%s2736_s2] sm:$0xff] }
   0x8   :  { %v2354_v55 = vld [vmem:[%s2742_s6] ss:$0 sm:$0xff] }
   0x9   :  { %161 = vmatmul.bf16.vlgmr.msra.gmra.mxu3 %v2211_v5 }
   0xa   :  { %263 = vmatpush.bf16.msrb.mxu3 %v2023_v35 }
   0xb   :  { %233 = vmatpush.bf16.msrb.mxu0 %v2024_v34  ;;  %338 = vmatpush.bf16.msra.mxu1 %v2026_v38 }
   0xe   :  { %264 = vmatpush.bf16.msrb.mxu3 %v2022_v37 }
  0x16   :  { %1762 = vmatmul.msk.bf16.gmra.mxu0 %vm78_vm1, %v2017_v33 }
  0x26   :  { %1763 = vmatmul.msk.bf16.gmra.mxu0 %vm78_vm1, %v2018_v39 }
  0x36   :  { %1764 = vmatmul.msk.bf16.gmra.mxu0 %vm78_vm1, %v2019_v43 }
  0x46   :  { %234 = vmatmul.bf16.vlgmr.msrb.gmra.mxu0 %v2211_v5 }
  0x83   :  { %v104_v7 = vpop.f32.mrf.mxu0 }
  0x8b   :  { %v106_v44 = vpop.f32.mrf.mxu0 }
  0x8c   :  { %v162_v8 = vpop.f32.mrf.mxu3 }
  0x8d   :  { %v166_v9 = vadd.f32 %v162_v8, %v104_v7 }
  0x8f   :  { %v167_v10 = vadd.f32 %v2296_v6, %v166_v9 }
  0x91   :  { %2081 = vtanh.f32 %v167_v10  ;;  %v1773_v13 = vmul.f32 -1.442695, %v167_v10 }
  0x93   :  { %2083 = vpow2.f32 %v1773_v13  ;;  %v2337_v45 = vpop.f32.mrf.mxu0 }
  0x94   :  { %v164_v11 = vpop.f32.mrf.mxu3 }
  0x97   :  { %v2082_v12 = vpop.eup %2081 }
  0x98   :  { %190 = vrot.lane.b32.xlu0 %v2082_v12, %s2212_s30 }
  0x99   :  { %v2084_v14 = vpop.eup %2083 }
  0x9a   :  { %v171_v15 = vadd.f32 1.0, %v2084_v14 }
  0x9b   :  { %v2339_v46 = vpop.f32.mrf.mxu0 }
  0x9c   :  { %2085 = vrcp.f32 %v171_v15  ;;  %v183_v21 = vand.u32 2147483648, %v171_v15  ;;  %vm177_vm3 = vweird.f32 %v171_v15  ;;  %v181_v22 = vand.u32 2147483647, %v171_v15 }
  0x9e   :  { %v184_v24 = vor.u32 1.1754944e-38, %v183_v21  ;;  %vm182_vm5 = vcmp.eq.f32.partialorder %v181_v22, 8.507059e+37 }
  0xa2   :  { %v2086_v16 = vpop.eup %2085 }
  0xa3   :  { %v173_v17 = vmul.f32 %v2086_v16, %v171_v15  ;;  %vm178_vm2 = vweird.f32 %v2086_v16  ;;  %v2341_v47 = vpop.f32.mrf.mxu0 }
  0xa4   :  { %vm179_vm4 = vmor %vm177_vm3, %vm178_vm2 }
  0xa5   :  { %v174_v18 = vsub.f32 1.0, %v173_v17 }
  0xa7   :  { %v175_v19 = vmul.f32 %v2086_v16, %v174_v18 }
  0xa9   :  { %v176_v20 = vadd.f32 %v2086_v16, %v175_v19 }
  0xab   :  { %v180_v23 = vsel %vm179_vm4, %v2086_v16, %v176_v20  ;;  %v2345_v49 = vpop.f32.mrf.mxu0 }
  0xac   :  { %v185_v26 = vsel %vm182_vm5, %v184_v24, %v180_v23 }
  0xad   :  { %v188_v28 = vmul.f32 0.0, %v185_v26 }
  0xb3   :  { %v2347_v50 = vpop.f32.mrf.mxu0 }
  0xbb   :  { %v2349_v51 = vpop.f32.mrf.mxu0 }
  0xc3   :  { %v235_v52 = vpop.f32.mrf.mxu0 }
  0xcb   :  { %v237_v53 = vpop.f32.mrf.mxu0 }
 0x10a   :  { %v191_v25 = vpop.permute.xlu0 %190 }
 0x10b   :  { %v193_v27 = vmul.f32 %v191_v25, %v185_v26 }
 0x10d   :  { %195 = vrot.lane.b32.xlu0 %v193_v27, %s2213_s13 }
 0x17f   :  { %v196_v29 = vpop.permute.xlu0 %195 }
 0x180   :  { %v2301_v30 = vadd.f32 %v196_v29, %v188_v28 }
 0x182   :  { %2087 = vtanh.f32 %v2301_v30 }
 0x188   :  { %v2088_v31 = vpop.eup %2087 }
 0x189   :  { %201 = vrot.lane.b32.xlu1 %v2088_v31, %s2212_s30 }
 0x1fb   :  { %v202_v40 = vpop.permute.xlu1 %201 }
 0x1fc   :  { %v204_v41 = vmul.f32 %v202_v40, %v185_v26 }
 0x1fe   :  { %v205_v42 = vpack.c.bf16 %v204_v41, %v204_v41 }
 0x200   :  { %240 = vrot.lane.b32.xlu1 %v205_v42, %s2213_s13 }
 0x272   :  { %v241_v48 = vpop.permute.xlu1 %240 }
 0x273   :  { %1790 = vmatmul.msk.bf16.vlgmr.msrb.gmra.mxu3 %vm149_vm6, %v241_v48  ;;  %1800 = vmatmul.msk.bf16.vlgmr.msra.gmra.mxu1 %vm149_vm6, %v241_v48  ;;  %v2030_v48 = vld [vmem:[%s2740_s4] sm:$0xff] }
 0x2f0   :  { %v340_v54 = vpop.f32.mrf.mxu1 }
 0x2f1   :  { %v344_v60 = vadd.f32 %v340_v54, %v106_v44  ;;  %v2031_v44 = vld [vmem:[%s2740_s4 + $0x8] sm:$0xff] }
 0x2f2   :  { %417 = vmatpush.bf16.msra.mxu2 %v2031_v44 }
 0x2f3   :  { %v345_v62 = vadd.f32 %v2296_v6, %v344_v60 }
 0x2f5   :  { %v1801_v2 = vmul.f32 -1.442695, %v345_v62 }
 0x2f6   :  { %v266_v56 = vpop.f32.mrf.mxu3  ;;  %418 = vmatpush.bf16.msra.mxu2 %v2030_v48 }
 0x2f7   :  { %v267_v57 = vadd.f32 %v266_v56, %v235_v52  ;;  %v2029_v56 = vld [vmem:[%s2741_s3 + $0x8] sm:$0xff] }
 0x2f8   :  { %v342_v58 = vpop.f32.mrf.mxu1  ;;  %448 = vmatpush.bf16.msra.mxu3 %v2029_v56 }
 0x2f9   :  { %v270_v59 = vadd.f32 %v2354_v55, %v267_v57  ;;  %v2032_v57 = vld [vmem:[%s2736_s2] sm:$0xff] }
 0x2fa   :  { %v2028_v58 = vld [vmem:[%s2741_s3] sm:$0xff] }
 0x2fb   :  { %2089 = vtanh.f32 %v270_v59  ;;  %v1791_v1 = vmul.f32 -1.442695, %v270_v59 }
 0x2fc   :  { %2091 = vtanh.f32 %v345_v62  ;;  %449 = vmatpush.bf16.msra.mxu3 %v2028_v58  ;;  %v2038_v58 = vld [vmem:[%s2736_s2] sm:$0xff] }
 0x2fd   :  { %2093 = vpow2.f32 %v1791_v1 }
 0x2fe   :  { %v268_v61 = vpop.f32.mrf.mxu3  ;;  %2095 = vpow2.f32 %v1801_v2 }
 0x301   :  { %v2090_v63 = vpop.eup %2089 }
 0x302   :  { %293 = vrot.lane.b32.xlu2 %v2090_v63, %s2212_s30  ;;  %v2092_v0 = vpop.eup %2091 }
 0x303   :  { %v2094_v3 = vpop.eup %2093 }
 0x304   :  { %v274_v4 = vadd.f32 1.0, %v2094_v3  ;;  %v2096_v5 = vpop.eup %2095 }
 0x305   :  { %v349_v7 = vadd.f32 1.0, %v2096_v5 }
 0x306   :  { %2097 = vrcp.f32 %v274_v4  ;;  %v286_v16 = vand.u32 2147483648, %v274_v4  ;;  %vm280_vm8 = vweird.f32 %v274_v4  ;;  %v284_v17 = vand.u32 2147483647, %v274_v4 }
 0x307   :  { %2099 = vrcp.f32 %v349_v7  ;;  %v361_v25 = vand.u32 2147483648, %v349_v7  ;;  %vm355_vm12 = vweird.f32 %v349_v7  ;;  %v359_v26 = vand.u32 2147483647, %v349_v7 }
 0x308   :  { %v287_v20 = vor.u32 1.1754944e-38, %v286_v16  ;;  %vm285_vm10 = vcmp.eq.f32.partialorder %v284_v17, 8.507059e+37 }
 0x309   :  { %v362_v28 = vor.u32 1.1754944e-38, %v361_v25  ;;  %vm360_vm14 = vcmp.eq.f32.partialorder %v359_v26, 8.507059e+37 }
 0x30a   :  { %368 = vrot.lane.b32.xlu2 %v2092_v0, %s2212_s30 }
 0x30c   :  { %v2098_v8 = vpop.eup %2097 }
 0x30d   :  { %v276_v9 = vmul.f32 %v2098_v8, %v274_v4  ;;  %v2100_v11 = vpop.eup %2099  ;;  %vm281_vm7 = vweird.f32 %v2098_v8 }
 0x30e   :  { %v351_v13 = vmul.f32 %v2100_v11, %v349_v7  ;;  %vm282_vm9 = vmor %vm280_vm8, %vm281_vm7  ;;  %vm356_vm11 = vweird.f32 %v2100_v11 }
 0x30f   :  { %v277_v10 = vsub.f32 1.0, %v276_v9  ;;  %vm357_vm13 = vmor %vm355_vm12, %vm356_vm11 }
 0x310   :  { %v352_v15 = vsub.f32 1.0, %v351_v13 }
 0x311   :  { %v278_v12 = vmul.f32 %v2098_v8, %v277_v10 }
 0x312   :  { %v353_v19 = vmul.f32 %v2100_v11, %v352_v15 }
 0x313   :  { %v279_v14 = vadd.f32 %v2098_v8, %v278_v12 }
 0x314   :  { %v354_v24 = vadd.f32 %v2100_v11, %v353_v19 }
 0x315   :  { %v283_v18 = vsel %vm282_vm9, %v2098_v8, %v279_v14 }
 0x316   :  { %v288_v22 = vsel %vm285_vm10, %v287_v20, %v283_v18  ;;  %v358_v27 = vsel %vm357_vm13, %v2100_v11, %v354_v24 }
 0x317   :  { %v363_v29 = vsel %vm360_vm14, %v362_v28, %v358_v27  ;;  %v291_v33 = vmul.f32 0.0, %v288_v22 }
 0x318   :  { %v366_v36 = vmul.f32 %v363_v29, %v2301_v30  ;;  %v2033_v30 = vld [vmem:[%s2736_s2 + $0x8] sm:$0xff] }
 0x319   :  { %523 = vmatpush.bf16.msrb.mxu1 %v2033_v30 }
 0x31d   :  { %524 = vmatpush.bf16.msrb.mxu1 %v2032_v57  ;;  %v2035_v57 = vld [vmem:[%s2741_s3 + $0x8] sm:$0xff] }
 0x31e   :  { %634 = vmatpush.bf16.msrb.mxu3 %v2035_v57 }
 0x35c   :  { %v294_v21 = vpop.permute.xlu2 %293 }
 0x35d   :  { %v296_v23 = vmul.f32 %v294_v21, %v288_v22 }
 0x35f   :  { %298 = vrot.lane.b32.xlu0 %v296_v23, %s2213_s13 }
 0x364   :  { %v369_v31 = vpop.permute.xlu2 %368 }
 0x365   :  { %v371_v32 = vmul.f32 %v369_v31, %v363_v29 }
 0x367   :  { %373 = vrot.lane.b32.xlu1 %v371_v32, %s2213_s13 }
 0x3d1   :  { %v299_v34 = vpop.permute.xlu0 %298 }
 0x3d2   :  { %v2362_v35 = vadd.f32 %v299_v34, %v291_v33 }
 0x3d4   :  { %2101 = vtanh.f32 %v2362_v35 }
 0x3d9   :  { %v374_v37 = vpop.permute.xlu1 %373 }
 0x3da   :  { %v2102_v38 = vpop.eup %2101  ;;  %v2366_v39 = vadd.f32 %v374_v37, %v366_v36 }
 0x3db   :  { %304 = vrot.lane.b32.xlu2 %v2102_v38, %s2212_s30 }
 0x3dc   :  { %2103 = vtanh.f32 %v2366_v39 }
 0x3e2   :  { %v2104_v40 = vpop.eup %2103 }
 0x3e3   :  { %379 = vrot.lane.b32.xlu0 %v2104_v40, %s2212_s30 }
 0x435   :  { %v305_v41 = vpop.permute.xlu2 %304 }
 0x436   :  { %v2371_v42 = vmul.f32 %v305_v41, %v288_v22 }
 0x438   :  { %v388_v43 = vpack.c.bf16 %v2371_v42, %v2371_v42 }
 0x43a   :  { %394 = vrot.lane.b32.xlu1 %v388_v43, %s2213_s13 }
 0x455   :  { %v380_v52 = vpop.permute.xlu0 %379 }
 0x456   :  { %v382_v53 = vmul.f32 %v380_v52, %v363_v29 }
 0x458   :  { %v383_v54 = vpack.c.bf16 %v382_v53, %v382_v53 }
 0x45a   :  { %425 = vrot.lane.b32.xlu2 %v383_v54, %s2213_s13 }
 0x4ac   :  { %v395_v59 = vpop.permute.xlu1 %394 }
 0x4ad   :  { %1810 = vmatmul.msk.bf16.vlgmr.msra.gmra.mxu2 %vm149_vm6, %v395_v59  ;;  %v2034_v59 = vld [vmem:[%s2741_s3] sm:$0xff] }
 0x4ae   :  { %635 = vmatpush.bf16.msrb.mxu3 %v2034_v59 }
 0x4b4   :  { %v426_v60 = vpop.permute.xlu2 %425 }
 0x4b5   :  { %1819 = vmatmul.msk.bf16.vlgmr.msra.gmra.mxu3 %vm149_vm6, %v426_v60  ;;  %1829 = vmatmul.msk.bf16.vlgmr.msrb.gmra.mxu1 %vm149_vm6, %v426_v60 }
 0x530   :  { %v420_v61 = vpop.f32.mrf.mxu2 }
 0x532   :  { %v526_v62 = vpop.f32.mrf.mxu1 }
 0x533   :  { %v530_v63 = vadd.f32 %v526_v62, %v2337_v45 }
 0x535   :  { %v531_v0 = vadd.f32 %v2296_v6, %v530_v63 }
 0x537   :  { %2105 = vtanh.f32 %v531_v0  ;;  %v1830_v10 = vmul.f32 -1.442695, %v531_v0 }
 0x538   :  { %v422_v1 = vpop.f32.mrf.mxu2  ;;  %v451_v2 = vpop.f32.mrf.mxu3 }
 0x539   :  { %v452_v3 = vadd.f32 %v451_v2, %v420_v61  ;;  %v2036_v2 = vld [vmem:[%s2740_s4] sm:$0xff] }
 0x53a   :  { %v528_v4 = vpop.f32.mrf.mxu1 }
 0x53b   :  { %v455_v5 = vadd.f32 %v2354_v55, %v452_v3 }
 0x53d   :  { %v2106_v7 = vpop.eup %2105  ;;  %2107 = vtanh.f32 %v455_v5  ;;  %v1820_v45 = vmul.f32 -1.442695, %v455_v5 }
 0x53e   :  { %554 = vrot.lane.b32.xlu1 %v2106_v7, %s2212_s30  ;;  %2109 = vpow2.f32 %v1830_v10 }
 0x53f   :  { %2111 = vpow2.f32 %v1820_v45 }
 0x540   :  { %v453_v8 = vpop.f32.mrf.mxu3 }
 0x543   :  { %v2108_v9 = vpop.eup %2107 }
 0x544   :  { %478 = vrot.lane.b32.xlu0 %v2108_v9, %s2212_s30  ;;  %v2110_v11 = vpop.eup %2109 }
 0x545   :  { %v535_v12 = vadd.f32 1.0, %v2110_v11  ;;  %v2112_v13 = vpop.eup %2111 }
 0x546   :  { %v459_v14 = vadd.f32 1.0, %v2112_v13 }
 0x547   :  { %2113 = vrcp.f32 %v535_v12  ;;  %v547_v23 = vand.u32 2147483648, %v535_v12  ;;  %vm541_vm0 = vweird.f32 %v535_v12  ;;  %v545_v24 = vand.u32 2147483647, %v535_v12 }
 0x548   :  { %2115 = vrcp.f32 %v459_v14  ;;  %v471_v32 = vand.u32 2147483648, %v459_v14  ;;  %vm465_vm4 = vweird.f32 %v459_v14  ;;  %v469_v34 = vand.u32 2147483647, %v459_v14 }
 0x549   :  { %v548_v27 = vor.u32 1.1754944e-38, %v547_v23  ;;  %vm546_vm2 = vcmp.eq.f32.partialorder %v545_v24, 8.507059e+37 }
 0x54a   :  { %v472_v37 = vor.u32 1.1754944e-38, %v471_v32  ;;  %vm470_vm7 = vcmp.eq.f32.partialorder %v469_v34, 8.507059e+37 }
 0x54d   :  { %v2114_v15 = vpop.eup %2113 }
 0x54e   :  { %v537_v16 = vmul.f32 %v2114_v15, %v535_v12  ;;  %v2116_v17 = vpop.eup %2115  ;;  %vm542_vm15 = vweird.f32 %v2114_v15 }
 0x54f   :  { %v461_v19 = vmul.f32 %v2116_v17, %v459_v14  ;;  %vm543_vm1 = vmor %vm541_vm0, %vm542_vm15  ;;  %vm466_vm3 = vweird.f32 %v2116_v17 }
 0x550   :  { %v538_v18 = vsub.f32 1.0, %v537_v16  ;;  %vm467_vm5 = vmor %vm465_vm4, %vm466_vm3 }
 0x551   :  { %v462_v21 = vsub.f32 1.0, %v461_v19 }
 0x552   :  { %v539_v20 = vmul.f32 %v2114_v15, %v538_v18 }
 0x553   :  { %v463_v25 = vmul.f32 %v2116_v17, %v462_v21 }
 0x554   :  { %v540_v22 = vadd.f32 %v2114_v15, %v539_v20 }
 0x555   :  { %v464_v28 = vadd.f32 %v2116_v17, %v463_v25 }
 0x556   :  { %v544_v26 = vsel %vm543_vm1, %v2114_v15, %v540_v22 }
 0x557   :  { %v549_v31 = vsel %vm546_vm2, %v548_v27, %v544_v26  ;;  %v468_v36 = vsel %vm467_vm5, %v2116_v17, %v464_v28 }
 0x558   :  { %v473_v40 = vsel %vm470_vm7, %v472_v37, %v468_v36  ;;  %v552_v52 = vmul.f32 %v549_v31, %v2366_v39  ;;  %v2037_v39 = vld [vmem:[%s2740_s4 + $0x8] sm:$0xff] }
 0x559   :  { %v476_v43 = vmul.f32 %v473_v40, %v2362_v35  ;;  %v2039_v35 = vld [vmem:[%s2736_s2 + $0x8] sm:$0xff]  ;;  %603 = vmatpush.bf16.msrb.mxu2 %v2037_v39 }
 0x55a   :  { %709 = vmatpush.bf16.msra.mxu1 %v2039_v35 }
 0x55d   :  { %604 = vmatpush.bf16.msrb.mxu2 %v2036_v2 }
 0x55e   :  { %710 = vmatpush.bf16.msra.mxu1 %v2038_v58 }
 0x5b0   :  { %v555_v29 = vpop.permute.xlu1 %554 }
 0x5b1   :  { %v557_v33 = vmul.f32 %v555_v29, %v549_v31 }
 0x5b3   :  { %559 = vrot.lane.b32.xlu0 %v557_v33, %s2213_s13 }
 0x5b6   :  { %v479_v38 = vpop.permute.xlu0 %478 }
 0x5b7   :  { %v481_v41 = vmul.f32 %v479_v38, %v473_v40 }
 0x5b9   :  { %483 = vrot.lane.b32.xlu2 %v481_v41, %s2213_s13 }
 0x613   :  { %v484_v30 = vpop.permute.xlu2 %483 }
 0x614   :  { %v2406_v44 = vadd.f32 %v484_v30, %v476_v43 }
 0x616   :  { %2117 = vtanh.f32 %v2406_v44 }
 0x61c   :  { %v2118_v48 = vpop.eup %2117 }
 0x61d   :  { %489 = vrot.lane.b32.xlu1 %v2118_v48, %s2212_s30 }
 0x625   :  { %v560_v53 = vpop.permute.xlu0 %559 }
 0x626   :  { %v2411_v54 = vadd.f32 %v560_v53, %v552_v52 }
 0x628   :  { %2119 = vtanh.f32 %v2411_v54 }
 0x62e   :  { %v2120_v56 = vpop.eup %2119 }
 0x62f   :  { %565 = vrot.lane.b32.xlu2 %v2120_v56, %s2212_s30 }
 0x689   :  { %v566_v60 = vpop.permute.xlu2 %565 }
 0x68a   :  { %v568_v61 = vmul.f32 %v566_v60, %v549_v31 }
 0x68c   :  { %v569_v62 = vpack.c.bf16 %v568_v61, %v568_v61 }
 0x68e   :  { %611 = vrot.lane.b32.xlu1 %v569_v62, %s2213_s13 }
 0x68f   :  { %v490_v63 = vpop.permute.xlu1 %489 }
 0x690   :  { %v2431_v0 = vmul.f32 %v490_v63, %v473_v40 }
 0x692   :  { %v574_v1 = vpack.c.bf16 %v2431_v0, %v2431_v0 }
 0x694   :  { %580 = vrot.lane.b32.xlu0 %v574_v1, %s2213_s13  ;;  %v2045_v1 = vld [vmem:[%s2736_s2 + $0x8] sm:$0xff] }
 0x695   :  { %895 = vmatpush.bf16.msra.mxu0 %v2045_v1 }
 0x700   :  { %v612_v3 = vpop.permute.xlu1 %611 }
 0x701   :  { %1848 = vmatmul.msk.bf16.vlgmr.msrb.gmra.mxu3 %vm149_vm6, %v612_v3  ;;  %1858 = vmatmul.msk.bf16.vlgmr.msra.gmra.mxu1 %vm149_vm6, %v612_v3 }
 0x706   :  { %v581_v4 = vpop.permute.xlu0 %580 }
 0x707   :  { %1839 = vmatmul.msk.bf16.vlgmr.msrb.gmra.mxu2 %vm149_vm6, %v581_v4 }
 0x77e   :  { %v712_v5 = vpop.f32.mrf.mxu1 }
 0x77f   :  { %v716_v7 = vadd.f32 %v712_v5, %v2339_v46 }
 0x781   :  { %v717_v8 = vadd.f32 %v2296_v6, %v716_v7 }
 0x783   :  { %2121 = vtanh.f32 %v717_v8  ;;  %v1859_v18 = vmul.f32 -1.442695, %v717_v8 }
 0x784   :  { %v637_v9 = vpop.f32.mrf.mxu3 }
 0x786   :  { %v714_v10 = vpop.f32.mrf.mxu1 }
 0x787   :  { %v2041_v10 = vld [vmem:[%s2741_s3 + $0x8] sm:$0xff] }
 0x788   :  { %820 = vmatpush.bf16.msra.mxu3 %v2041_v10  ;;  %v2048_v10 = vld [vmem:[%s2740_s4] sm:$0xff] }
 0x789   :  { %v2122_v45 = vpop.eup %2121 }
 0x78a   :  { %v606_v11 = vpop.f32.mrf.mxu2  ;;  %740 = vrot.lane.b32.xlu0 %v2122_v45, %s2212_s30  ;;  %v2040_v45 = vld [vmem:[%s2741_s3] sm:$0xff] }
 0x78b   :  { %v638_v12 = vadd.f32 %v637_v9, %v606_v11  ;;  %v2044_v9 = vld [vmem:[%s2736_s2] sm:$0xff] }
 0x78c   :  { %v639_v13 = vpop.f32.mrf.mxu3  ;;  %896 = vmatpush.bf16.msra.mxu0 %v2044_v9  ;;  %821 = vmatpush.bf16.msra.mxu3 %v2040_v45 }
 0x78d   :  { %v641_v14 = vadd.f32 %v2354_v55, %v638_v12 }
 0x78f   :  { %2123 = vtanh.f32 %v641_v14  ;;  %v1849_v17 = vmul.f32 -1.442695, %v641_v14 }
 0x791   :  { %2125 = vpow2.f32 %v1849_v17 }
 0x792   :  { %v608_v15 = vpop.f32.mrf.mxu2  ;;  %2127 = vpow2.f32 %v1859_v18 }
 0x795   :  { %v2124_v16 = vpop.eup %2123 }
 0x796   :  { %664 = vrot.lane.b32.xlu2 %v2124_v16, %s2212_s30 }
 0x797   :  { %v2126_v46 = vpop.eup %2125 }
 0x798   :  { %v645_v19 = vadd.f32 1.0, %v2126_v46  ;;  %v2128_v20 = vpop.eup %2127 }
 0x799   :  { %v721_v22 = vadd.f32 1.0, %v2128_v20 }
 0x79a   :  { %2129 = vrcp.f32 %v645_v19  ;;  %v657_v29 = vand.u32 2147483648, %v645_v19  ;;  %vm651_vm9 = vweird.f32 %v645_v19  ;;  %v655_v31 = vand.u32 2147483647, %v645_v19 }
 0x79b   :  { %2131 = vrcp.f32 %v721_v22  ;;  %v733_v43 = vand.u32 2147483648, %v721_v22  ;;  %vm727_vm13 = vweird.f32 %v721_v22  ;;  %v731_v30 = vand.u32 2147483647, %v721_v22 }
 0x79c   :  { %v658_v34 = vor.u32 1.1754944e-38, %v657_v29  ;;  %vm656_vm11 = vcmp.eq.f32.partialorder %v655_v31, 8.507059e+37 }
 0x79d   :  { %v734_v52 = vor.u32 1.1754944e-38, %v733_v43  ;;  %vm732_vm15 = vcmp.eq.f32.partialorder %v731_v30, 8.507059e+37 }
 0x7a0   :  { %v2130_v21 = vpop.eup %2129 }
 0x7a1   :  { %v647_v23 = vmul.f32 %v2130_v21, %v645_v19  ;;  %v2132_v26 = vpop.eup %2131  ;;  %vm652_vm8 = vweird.f32 %v2130_v21 }
 0x7a2   :  { %v723_v28 = vmul.f32 %v2132_v26, %v721_v22  ;;  %vm653_vm10 = vmor %vm651_vm9, %vm652_vm8  ;;  %vm728_vm12 = vweird.f32 %v2132_v26 }
 0x7a3   :  { %v648_v24 = vsub.f32 1.0, %v647_v23  ;;  %vm729_vm14 = vmor %vm727_vm13, %vm728_vm12 }
 0x7a4   :  { %v724_v33 = vsub.f32 1.0, %v723_v28 }
 0x7a5   :  { %v649_v25 = vmul.f32 %v2130_v21, %v648_v24 }
 0x7a6   :  { %v725_v40 = vmul.f32 %v2132_v26, %v724_v33 }
 0x7a7   :  { %v650_v27 = vadd.f32 %v2130_v21, %v649_v25 }
 0x7a8   :  { %v726_v41 = vadd.f32 %v2132_v26, %v725_v40 }
 0x7a9   :  { %v654_v32 = vsel %vm653_vm10, %v2130_v21, %v650_v27 }
 0x7aa   :  { %v659_v37 = vsel %vm656_vm11, %v658_v34, %v654_v32  ;;  %v730_v48 = vsel %vm729_vm14, %v2132_v26, %v726_v41 }
 0x7ab   :  { %v735_v56 = vsel %vm732_vm15, %v734_v52, %v730_v48  ;;  %v662_v60 = vmul.f32 %v659_v37, %v2406_v44  ;;  %v2042_v44 = vld [vmem:[%s2740_s4] sm:$0xff] }
 0x7ac   :  { %v738_v57 = vmul.f32 %v735_v56, %v2411_v54  ;;  %v2043_v54 = vld [vmem:[%s2740_s4 + $0x8] sm:$0xff] }
 0x7ad   :  { %789 = vmatpush.bf16.msra.mxu2 %v2043_v54 }
 0x7b1   :  { %790 = vmatpush.bf16.msra.mxu2 %v2042_v44 }
 0x7f0   :  { %v665_v36 = vpop.permute.xlu2 %664 }
 0x7f1   :  { %v667_v38 = vmul.f32 %v665_v36, %v659_v37 }
 0x7f3   :  { %669 = vrot.lane.b32.xlu1 %v667_v38, %s2213_s13 }
 0x7fc   :  { %v741_v53 = vpop.permute.xlu0 %740 }
 0x7fd   :  { %v743_v35 = vmul.f32 %v741_v53, %v735_v56 }
 0x7ff   :  { %745 = vrot.lane.b32.xlu2 %v743_v35, %s2213_s13 }
 0x859   :  { %v746_v39 = vpop.permute.xlu2 %745 }
 0x85a   :  { %v2450_v58 = vadd.f32 %v746_v39, %v738_v57 }
 0x85c   :  { %2133 = vtanh.f32 %v2450_v58 }
 0x862   :  { %v2134_v59 = vpop.eup %2133 }
 0x863   :  { %751 = vrot.lane.b32.xlu1 %v2134_v59, %s2212_s30 }
 0x865   :  { %v670_v61 = vpop.permute.xlu1 %669 }
 0x866   :  { %v2455_v62 = vadd.f32 %v670_v61, %v662_v60 }
 0x868   :  { %2135 = vtanh.f32 %v2455_v62 }
 0x86e   :  { %v2136_v63 = vpop.eup %2135 }
 0x86f   :  { %675 = vrot.lane.b32.xlu0 %v2136_v63, %s2212_s30 }
 0x8d5   :  { %v752_v2 = vpop.permute.xlu1 %751 }
 0x8d6   :  { %v754_v3 = vmul.f32 %v752_v2, %v735_v56 }
 0x8d8   :  { %v755_v4 = vpack.c.bf16 %v754_v3, %v754_v3 }
 0x8da   :  { %797 = vrot.lane.b32.xlu0 %v755_v4, %s2213_s13 }
 0x8e1   :  { %v676_v5 = vpop.permute.xlu0 %675 }
 0x8e2   :  { %v2469_v7 = vmul.f32 %v676_v5, %v659_v37 }
 0x8e4   :  { %v760_v8 = vpack.c.bf16 %v2469_v7, %v2469_v7 }
 0x8e6   :  { %766 = vrot.lane.b32.xlu2 %v760_v8, %s2213_s13 }
 0x940   :  { %v767_v11 = vpop.permute.xlu2 %766 }
 0x941   :  { %1868 = vmatmul.msk.bf16.vlgmr.msra.gmra.mxu2 %vm149_vm6, %v767_v11 }
 0x94c   :  { %v798_v12 = vpop.permute.xlu0 %797 }
 0x94d   :  { %1877 = vmatmul.msk.bf16.vlgmr.msra.gmra.mxu3 %vm149_vm6, %v798_v12  ;;  %1887 = vmatmul.msk.bf16.vlgmr.msra.gmra.mxu0 %vm149_vm6, %v798_v12 }
 0x9c4   :  { %v792_v13 = vpop.f32.mrf.mxu2 }
 0x9ca   :  { %v898_v14 = vpop.f32.mrf.mxu0 }
 0x9cb   :  { %v902_v15 = vadd.f32 %v898_v14, %v2341_v47 }
 0x9cc   :  { %v794_v16 = vpop.f32.mrf.mxu2 }
 0x9cd   :  { %v903_v17 = vadd.f32 %v2296_v6, %v902_v15  ;;  %v2051_v15 = vld [vmem:[%s2736_s2 + $0x8] sm:$0xff] }
 0x9ce   :  { %v2047_v16 = vld [vmem:[%s2741_s3 + $0x8] sm:$0xff]  ;;  %1081 = vmatpush.bf16.msrb.mxu3 %v2051_v15 }
 0x9cf   :  { %2137 = vtanh.f32 %v903_v17  ;;  %v1888_v26 = vmul.f32 -1.442695, %v903_v17  ;;  %v2050_v17 = vld [vmem:[%s2736_s2] sm:$0xff]  ;;  %1006 = vmatpush.bf16.msrb.mxu2 %v2047_v16  ;;  %v2055_v16 = vld [vmem:[%s2740_s4 + $0x8] sm:$0xff] }
 0x9d0   :  { %v823_v46 = vpop.f32.mrf.mxu3  ;;  %1161 = vmatpush.bf16.msrb.mxu0 %v2055_v16 }
 0x9d1   :  { %v824_v18 = vadd.f32 %v823_v46, %v792_v13  ;;  %v2046_v46 = vld [vmem:[%s2741_s3] sm:$0xff] }
 0x9d2   :  { %v900_v19 = vpop.f32.mrf.mxu0  ;;  %1082 = vmatpush.bf16.msrb.mxu3 %v2050_v17  ;;  %v2056_v17 = vld [vmem:[%s2736_s2] sm:$0xff] }
 0x9d3   :  { %v827_v20 = vadd.f32 %v2354_v55, %v824_v18  ;;  %1007 = vmatpush.bf16.msrb.mxu2 %v2046_v46  ;;  %v2054_v46 = vld [vmem:[%s2740_s4] sm:$0xff] }
 0x9d4   :  { %1162 = vmatpush.bf16.msrb.mxu0 %v2054_v46 }
 0x9d5   :  { %v2138_v21 = vpop.eup %2137  ;;  %2139 = vtanh.f32 %v827_v20  ;;  %v1878_v24 = vmul.f32 -1.442695, %v827_v20 }
 0x9d6   :  { %926 = vrot.lane.b32.xlu1 %v2138_v21, %s2212_s30 }
 0x9d7   :  { %2141 = vpow2.f32 %v1878_v24 }
 0x9d8   :  { %v825_v22 = vpop.f32.mrf.mxu3 }
 0x9db   :  { %v2140_v23 = vpop.eup %2139 }
 0x9dc   :  { %850 = vrot.lane.b32.xlu2 %v2140_v23, %s2212_s30 }
 0x9dd   :  { %v2142_v47 = vpop.eup %2141 }
 0x9de   :  { %v831_v25 = vadd.f32 1.0, %v2142_v47 }
 0x9e0   :  { %2143 = vrcp.f32 %v831_v25  ;;  %v843_v36 = vand.u32 2147483648, %v831_v25  ;;  %vm837_vm1 = vweird.f32 %v831_v25  ;;  %v841_v37 = vand.u32 2147483647, %v831_v25 }
 0x9e1   :  { %2145 = vpow2.f32 %v1888_v26 }
 0x9e2   :  { %v844_v41 = vor.u32 1.1754944e-38, %v843_v36  ;;  %vm842_vm3 = vcmp.eq.f32.partialorder %v841_v37, 8.507059e+37 }
 0x9e6   :  { %v2144_v27 = vpop.eup %2143 }
 0x9e7   :  { %v833_v28 = vmul.f32 %v2144_v27, %v831_v25  ;;  %v2146_v29 = vpop.eup %2145  ;;  %vm838_vm0 = vweird.f32 %v2144_v27 }
 0x9e8   :  { %v907_v32 = vadd.f32 1.0, %v2146_v29  ;;  %vm839_vm2 = vmor %vm837_vm1, %vm838_vm0 }
 0x9e9   :  { %v834_v31 = vsub.f32 1.0, %v833_v28 }
 0x9ea   :  { %2147 = vrcp.f32 %v907_v32  ;;  %v919_v57 = vand.u32 2147483648, %v907_v32  ;;  %vm913_vm5 = vweird.f32 %v907_v32  ;;  %v917_v39 = vand.u32 2147483647, %v907_v32 }
 0x9eb   :  { %v835_v33 = vmul.f32 %v2144_v27, %v834_v31 }
 0x9ec   :  { %v920_v60 = vor.u32 1.1754944e-38, %v919_v57  ;;  %vm918_vm8 = vcmp.eq.f32.partialorder %v917_v39, 8.507059e+37 }
 0x9ed   :  { %v836_v34 = vadd.f32 %v2144_v27, %v835_v33 }
 0x9ef   :  { %v840_v40 = vsel %vm839_vm2, %v2144_v27, %v836_v34 }
 0x9f0   :  { %v2148_v38 = vpop.eup %2147  ;;  %v845_v48 = vsel %vm842_vm3, %v844_v41, %v840_v40 }
 0x9f1   :  { %v909_v43 = vmul.f32 %v2148_v38, %v907_v32  ;;  %vm914_vm4 = vweird.f32 %v2148_v38  ;;  %v848_v1 = vmul.f32 %v845_v48, %v2455_v62  ;;  %v2049_v62 = vld [vmem:[%s2740_s4 + $0x8] sm:$0xff] }
 0x9f2   :  { %vm915_vm7 = vmor %vm913_vm5, %vm914_vm4  ;;  %975 = vmatpush.bf16.msrb.mxu1 %v2049_v62 }
 0x9f3   :  { %v910_v53 = vsub.f32 1.0, %v909_v43 }
 0x9f5   :  { %v911_v56 = vmul.f32 %v2148_v38, %v910_v53 }
 0x9f6   :  { %976 = vmatpush.bf16.msrb.mxu1 %v2048_v10 }
 0x9f7   :  { %v912_v35 = vadd.f32 %v2148_v38, %v911_v56 }
 0x9f9   :  { %v916_v59 = vsel %vm915_vm7, %v2148_v38, %v912_v35 }
 0x9fa   :  { %v921_v63 = vsel %vm918_vm8, %v920_v60, %v916_v59 }
 0x9fb   :  { %v924_v4 = vmul.f32 %v921_v63, %v2450_v58 }
 0xa36   :  { %v851_v30 = vpop.permute.xlu2 %850 }
 0xa37   :  { %v853_v52 = vmul.f32 %v851_v30, %v845_v48 }
 0xa39   :  { %855 = vrot.lane.b32.xlu1 %v853_v52, %s2213_s13 }
 0xa48   :  { %v927_v61 = vpop.permute.xlu1 %926 }
 0xa49   :  { %v929_v54 = vmul.f32 %v927_v61, %v921_v63 }
 0xa4b   :  { %931 = vrot.lane.b32.xlu0 %v929_v54, %s2213_s13 }
 0xaab   :  { %v856_v44 = vpop.permute.xlu1 %855 }
 0xaac   :  { %v2494_v2 = vadd.f32 %v856_v44, %v848_v1 }
 0xaae   :  { %2149 = vtanh.f32 %v2494_v2 }
 0xab4   :  { %v2150_v3 = vpop.eup %2149 }
 0xab5   :  { %861 = vrot.lane.b32.xlu0 %v2150_v3, %s2212_s30 }
 0xabd   :  { %v932_v5 = vpop.permute.xlu0 %931 }
 0xabe   :  { %v2499_v8 = vadd.f32 %v932_v5, %v924_v4 }
 0xac0   :  { %2151 = vtanh.f32 %v2499_v8 }
 0xac6   :  { %v2152_v9 = vpop.eup %2151 }
 0xac7   :  { %937 = vrot.lane.b32.xlu2 %v2152_v9, %s2212_s30 }
 0xb21   :  { %v938_v45 = vpop.permute.xlu2 %937 }
 0xb22   :  { %v940_v58 = vmul.f32 %v938_v45, %v921_v63 }
 0xb24   :  { %v941_v11 = vpack.c.bf16 %v940_v58, %v940_v58 }
 0xb26   :  { %983 = vrot.lane.b32.xlu1 %v941_v11, %s2213_s13 }
 0xb27   :  { %v862_v12 = vpop.permute.xlu0 %861 }
 0xb28   :  { %v2510_v13 = vmul.f32 %v862_v12, %v845_v48 }
 0xb2a   :  { %v946_v14 = vpack.c.bf16 %v2510_v13, %v2510_v13 }
 0xb2c   :  { %952 = vrot.lane.b32.xlu2 %v946_v14, %s2213_s13 }
 0xb86   :  { %v953_v18 = vpop.permute.xlu2 %952 }
 0xb87   :  { %1897 = vmatmul.msk.bf16.vlgmr.msrb.gmra.mxu1 %vm149_vm6, %v953_v18  ;;  %v2052_v18 = vld [vmem:[%s2741_s3] sm:$0xff] }
 0xb98   :  { %v984_v19 = vpop.permute.xlu1 %983 }
 0xb99   :  { %1906 = vmatmul.msk.bf16.vlgmr.msrb.gmra.mxu2 %vm149_vm6, %v984_v19  ;;  %1916 = vmatmul.msk.bf16.vlgmr.msrb.gmra.mxu3 %vm149_vm6, %v984_v19 }
 0xc04   :  { %v978_v20 = vpop.f32.mrf.mxu1 }
 0xc0c   :  { %v980_v21 = vpop.f32.mrf.mxu1 }
 0xc1c   :  { %v1009_v22 = vpop.f32.mrf.mxu2  ;;  %v1084_v23 = vpop.f32.mrf.mxu3 }
 0xc1d   :  { %v1010_v24 = vadd.f32 %v1009_v22, %v978_v20  ;;  %v1088_v47 = vadd.f32 %v1084_v23, %v2345_v49 }
 0xc1f   :  { %v1013_v25 = vadd.f32 %v2354_v55, %v1010_v24  ;;  %v1089_v26 = vadd.f32 %v2296_v6, %v1088_v47 }
 0xc21   :  { %2153 = vtanh.f32 %v1013_v25  ;;  %v1907_v32 = vmul.f32 -1.442695, %v1013_v25  ;;  %v1917_v33 = vmul.f32 -1.442695, %v1089_v26 }
 0xc22   :  { %2155 = vtanh.f32 %v1089_v26 }
 0xc23   :  { %2157 = vpow2.f32 %v1907_v32 }
 0xc24   :  { %v1011_v27 = vpop.f32.mrf.mxu2  ;;  %v1086_v28 = vpop.f32.mrf.mxu3  ;;  %2159 = vpow2.f32 %v1917_v33 }
 0xc27   :  { %v2154_v29 = vpop.eup %2153 }
 0xc28   :  { %v2156_v31 = vpop.eup %2155  ;;  %1036 = vrot.lane.b32.xlu0 %v2154_v29, %s2212_s30 }
 0xc29   :  { %1112 = vrot.lane.b32.xlu1 %v2156_v31, %s2212_s30  ;;  %v2158_v34 = vpop.eup %2157 }
 0xc2a   :  { %v2160_v49 = vpop.eup %2159  ;;  %v1017_v36 = vadd.f32 1.0, %v2158_v34 }
 0xc2b   :  { %v1093_v37 = vadd.f32 1.0, %v2160_v49  ;;  %v2579_v49 = vld [vmem:[%s2739_s5] ss:$0 sm:$0xff] }
 0xc2c   :  { %2161 = vrcp.f32 %v1017_v36  ;;  %v1029_v35 = vand.u32 2147483648, %v1017_v36  ;;  %vm1023_vm11 = vweird.f32 %v1017_v36  ;;  %v1027_v39 = vand.u32 2147483647, %v1017_v36 }
 0xc2d   :  { %2163 = vrcp.f32 %v1093_v37  ;;  %v1105_v57 = vand.u32 2147483648, %v1093_v37  ;;  %vm1099_vm12 = vweird.f32 %v1093_v37  ;;  %v1103_v59 = vand.u32 2147483647, %v1093_v37 }
 0xc2e   :  { %v1030_v63 = vor.u32 1.1754944e-38, %v1029_v35  ;;  %vm1028_vm15 = vcmp.eq.f32.partialorder %v1027_v39, 8.507059e+37 }
 0xc2f   :  { %v1106_v54 = vor.u32 1.1754944e-38, %v1105_v57  ;;  %vm1104_vm0 = vcmp.eq.f32.partialorder %v1103_v59, 8.507059e+37 }
 0xc32   :  { %v2162_v6 = vpop.eup %2161 }
 0xc33   :  { %v2164_v38 = vpop.eup %2163  ;;  %v1019_v40 = vmul.f32 %v2162_v6, %v1017_v36  ;;  %vm1024_vm9 = vweird.f32 %v2162_v6 }
 0xc34   :  { %v1095_v41 = vmul.f32 %v2164_v38, %v1093_v37  ;;  %vm1100_vm10 = vweird.f32 %v2164_v38  ;;  %vm1025_vm13 = vmor %vm1023_vm11, %vm1024_vm9 }
 0xc35   :  { %v1020_v43 = vsub.f32 1.0, %v1019_v40  ;;  %vm1101_vm14 = vmor %vm1099_vm12, %vm1100_vm10 }
 0xc36   :  { %v1096_v30 = vsub.f32 1.0, %v1095_v41 }
 0xc37   :  { %v1021_v48 = vmul.f32 %v2162_v6, %v1020_v43 }
 0xc38   :  { %v1097_v52 = vmul.f32 %v2164_v38, %v1096_v30 }
 0xc39   :  { %v1022_v53 = vadd.f32 %v2162_v6, %v1021_v48 }
 0xc3a   :  { %v1098_v56 = vadd.f32 %v2164_v38, %v1097_v52 }
 0xc3b   :  { %v1026_v60 = vsel %vm1025_vm13, %v2162_v6, %v1022_v53 }
 0xc3c   :  { %v1102_v61 = vsel %vm1101_vm14, %v2164_v38, %v1098_v56  ;;  %v1031_v44 = vsel %vm1028_vm15, %v1030_v63, %v1026_v60 }
 0xc3d   :  { %v1107_v4 = vsel %vm1104_vm0, %v1106_v54, %v1102_v61  ;;  %v1034_v62 = vmul.f32 %v1031_v44, %v2494_v2  ;;  %v2057_v2 = vld [vmem:[%s2736_s2 + $0x8] sm:$0xff] }
 0xc3e   :  { %v1110_v11 = vmul.f32 %v1107_v4, %v2499_v8  ;;  %v2053_v8 = vld [vmem:[%s2741_s3 + $0x8] sm:$0xff]  ;;  %1267 = vmatpush.bf16.msra.mxu2 %v2057_v2 }
 0xc3f   :  { %1192 = vmatpush.bf16.msra.mxu1 %v2053_v8 }
 0xc42   :  { %1268 = vmatpush.bf16.msra.mxu2 %v2056_v17 }
 0xc43   :  { %1193 = vmatpush.bf16.msra.mxu1 %v2052_v18 }
 0xc9a   :  { %v1037_v1 = vpop.permute.xlu0 %1036 }
 0xc9b   :  { %v1113_v3 = vpop.permute.xlu1 %1112  ;;  %v1039_v5 = vmul.f32 %v1037_v1, %v1031_v44 }
 0xc9c   :  { %v1115_v9 = vmul.f32 %v1113_v3, %v1107_v4 }
 0xc9d   :  { %1041 = vrot.lane.b32.xlu2 %v1039_v5, %s2213_s13 }
 0xc9e   :  { %1117 = vrot.lane.b32.xlu0 %v1115_v9, %s2213_s13 }
 0xcf7   :  { %v1042_v10 = vpop.permute.xlu2 %1041 }
 0xcf8   :  { %v2538_v45 = vadd.f32 %v1042_v10, %v1034_v62 }
 0xcfa   :  { %2165 = vtanh.f32 %v2538_v45 }
 0xd00   :  { %v2166_v58 = vpop.eup %2165 }
 0xd01   :  { %1047 = vrot.lane.b32.xlu1 %v2166_v58, %s2212_s30 }
 0xd10   :  { %v1118_v12 = vpop.permute.xlu0 %1117 }
 0xd11   :  { %v2543_v14 = vadd.f32 %v1118_v12, %v1110_v11 }
 0xd13   :  { %2167 = vtanh.f32 %v2543_v14 }
 0xd19   :  { %v2168_v15 = vpop.eup %2167 }
 0xd1a   :  { %1123 = vrot.lane.b32.xlu2 %v2168_v15, %s2212_s30 }
 0xd73   :  { %v1048_v19 = vpop.permute.xlu1 %1047 }
 0xd74   :  { %v1124_v20 = vpop.permute.xlu2 %1123  ;;  %v2565_v21 = vmul.f32 %v1048_v19, %v1031_v44 }
 0xd75   :  { %v1126_v22 = vmul.f32 %v1124_v20, %v1107_v4 }
 0xd76   :  { %v1132_v23 = vpack.c.bf16 %v2565_v21, %v2565_v21 }
 0xd77   :  { %v1127_v24 = vpack.c.bf16 %v1126_v22, %v1126_v22 }
 0xd78   :  { %1138 = vrot.lane.b32.xlu0 %v1132_v23, %s2213_s13 }
 0xd79   :  { %1169 = vrot.lane.b32.xlu1 %v1127_v24, %s2213_s13 }
 0xdea   :  { %v1139_v47 = vpop.permute.xlu0 %1138 }
 0xdeb   :  { %v1170_v25 = vpop.permute.xlu1 %1169  ;;  %1926 = vmatmul.msk.bf16.vlgmr.msrb.gmra.mxu0 %vm149_vm6, %v1139_v47 }
 0xdec   :  { %1935 = vmatmul.msk.bf16.vlgmr.msra.gmra.mxu1 %vm149_vm6, %v1170_v25  ;;  %1945 = vmatmul.msk.bf16.vlgmr.msra.gmra.mxu2 %vm149_vm6, %v1170_v25 }
 0xe68   :  { %v1164_v26 = vpop.f32.mrf.mxu0 }
 0xe69   :  { %v1195_v27 = vpop.f32.mrf.mxu1 }
 0xe6a   :  { %v1196_v28 = vadd.f32 %v1195_v27, %v1164_v26  ;;  %v2059_v27 = vld [vmem:[%s2741_s3 + $0x8] sm:$0xff] }
 0xe6b   :  { %1378 = vmatpush.bf16.msra.mxu0 %v2059_v27 }
 0xe6c   :  { %v1199_v29 = vadd.f32 %v2354_v55, %v1196_v28  ;;  %v2063_v28 = vld [vmem:[%s2736_s2 + $0x8] sm:$0xff] }
 0xe6d   :  { %1453 = vmatpush.bf16.msrb.mxu1 %v2063_v28  ;;  %v2064_v28 = vld [vmem:[%s2741_s3] sm:$0xff] }
 0xe6e   :  { %2169 = vtanh.f32 %v1199_v29  ;;  %v1936_v55 = vmul.f32 -1.442695, %v1199_v29  ;;  %v2058_v29 = vld [vmem:[%s2741_s3] sm:$0xff] }
 0xe6f   :  { %v1270_v31 = vpop.f32.mrf.mxu2  ;;  %1379 = vmatpush.bf16.msra.mxu0 %v2058_v29 }
 0xe70   :  { %v1274_v32 = vadd.f32 %v1270_v31, %v2347_v50  ;;  %v1166_v33 = vpop.f32.mrf.mxu0  ;;  %v2062_v31 = vld [vmem:[%s2736_s2] sm:$0xff] }
 0xe71   :  { %v1197_v34 = vpop.f32.mrf.mxu1  ;;  %1454 = vmatpush.bf16.msrb.mxu1 %v2062_v31 }
 0xe72   :  { %v1275_v36 = vadd.f32 %v2579_v49, %v1274_v32 }
 0xe74   :  { %v2170_v37 = vpop.eup %2169  ;;  %2171 = vtanh.f32 %v1275_v36  ;;  %v1946_v30 = vmul.f32 -1.442695, %v1275_v36 }
 0xe75   :  { %1222 = vrot.lane.b32.xlu2 %v2170_v37, %s2212_s30  ;;  %2173 = vpow2.f32 %v1936_v55 }
 0xe77   :  { %v1272_v6 = vpop.f32.mrf.mxu2 }
 0xe7a   :  { %v2172_v38 = vpop.eup %2171 }
 0xe7b   :  { %1298 = vrot.lane.b32.xlu0 %v2172_v38, %s2212_s30  ;;  %v2174_v50 = vpop.eup %2173 }
 0xe7c   :  { %v1203_v40 = vadd.f32 1.0, %v2174_v50  ;;  %v2627_v50 = vld [vmem:[%s2742_s6] ss:$0 sm:$0xff] }
 0xe7e   :  { %2175 = vrcp.f32 %v1203_v40  ;;  %v1215_v56 = vand.u32 2147483648, %v1203_v40  ;;  %vm1209_vm2 = vweird.f32 %v1203_v40  ;;  %v1213_v57 = vand.u32 2147483647, %v1203_v40 }
 0xe7f   :  { %2177 = vpow2.f32 %v1946_v30 }
 0xe80   :  { %v1216_v60 = vor.u32 1.1754944e-38, %v1215_v56  ;;  %vm1214_vm4 = vcmp.eq.f32.partialorder %v1213_v57, 8.507059e+37 }
 0xe84   :  { %v2176_v41 = vpop.eup %2175 }
 0xe85   :  { %v1205_v43 = vmul.f32 %v2176_v41, %v1203_v40  ;;  %vm1210_vm1 = vweird.f32 %v2176_v41  ;;  %v2178_v35 = vpop.eup %2177 }
 0xe86   :  { %vm1211_vm3 = vmor %vm1209_vm2, %vm1210_vm1  ;;  %v1279_v59 = vadd.f32 1.0, %v2178_v35 }
 0xe87   :  { %v1206_v48 = vsub.f32 1.0, %v1205_v43 }
 0xe88   :  { %2179 = vrcp.f32 %v1279_v59  ;;  %v1291_v9 = vand.u32 2147483648, %v1279_v59  ;;  %vm1285_vm7 = vweird.f32 %v1279_v59  ;;  %v1289_v62 = vand.u32 2147483647, %v1279_v59 }
 0xe89   :  { %v1207_v52 = vmul.f32 %v2176_v41, %v1206_v48 }
 0xe8a   :  { %v1292_v58 = vor.u32 1.1754944e-38, %v1291_v9  ;;  %vm1290_vm9 = vcmp.eq.f32.partialorder %v1289_v62, 8.507059e+37 }
 0xe8b   :  { %v1208_v53 = vadd.f32 %v2176_v41, %v1207_v52 }
 0xe8d   :  { %v1212_v39 = vsel %vm1211_vm3, %v2176_v41, %v1208_v53 }
 0xe8e   :  { %v1217_v63 = vsel %vm1214_vm4, %v1216_v60, %v1212_v39  ;;  %v2180_v1 = vpop.eup %2179 }
 0xe8f   :  { %v1281_v44 = vmul.f32 %v2180_v1, %v1279_v59  ;;  %vm1286_vm5 = vweird.f32 %v2180_v1  ;;  %v1220_v2 = vmul.f32 %v1217_v63, %v2538_v45  ;;  %v2061_v45 = vld [vmem:[%s2740_s4 + $0x8] sm:$0xff] }
 0xe90   :  { %vm1287_vm8 = vmor %vm1285_vm7, %vm1286_vm5  ;;  %1347 = vmatpush.bf16.msra.mxu3 %v2061_v45 }
 0xe91   :  { %v1282_v3 = vsub.f32 1.0, %v1281_v44 }
 0xe93   :  { %v1283_v4 = vmul.f32 %v2180_v1, %v1282_v3 }
 0xe95   :  { %v1284_v5 = vadd.f32 %v2180_v1, %v1283_v4 }
 0xe97   :  { %v1288_v10 = vsel %vm1287_vm8, %v2180_v1, %v1284_v5 }
 0xe98   :  { %v1293_v12 = vsel %vm1290_vm9, %v1292_v58, %v1288_v10 }
 0xe99   :  { %v1296_v17 = vmul.f32 %v1293_v12, %v2543_v14  ;;  %v2060_v14 = vld [vmem:[%s2740_s4] sm:$0xff] }
 0xe9a   :  { %1348 = vmatpush.bf16.msra.mxu3 %v2060_v14 }
 0xecf   :  { %v1223_v61 = vpop.permute.xlu2 %1222 }
 0xed0   :  { %v1225_v54 = vmul.f32 %v1223_v61, %v1217_v63 }
 0xed2   :  { %1227 = vrot.lane.b32.xlu1 %v1225_v54, %s2213_s13 }
 0xeed   :  { %v1299_v11 = vpop.permute.xlu0 %1298 }
 0xeee   :  { %v1301_v15 = vmul.f32 %v1299_v11, %v1293_v12 }
 0xef0   :  { %1303 = vrot.lane.b32.xlu2 %v1301_v15, %s2213_s13 }
 0xf44   :  { %v1228_v16 = vpop.permute.xlu1 %1227 }
 0xf45   :  { %v2587_v8 = vadd.f32 %v1228_v16, %v1220_v2 }
 0xf47   :  { %2181 = vtanh.f32 %v2587_v8 }
 0xf4a   :  { %v1304_v46 = vpop.permute.xlu2 %1303 }
 0xf4b   :  { %v2591_v18 = vadd.f32 %v1304_v46, %v1296_v17 }
 0xf4d   :  { %v2182_v19 = vpop.eup %2181  ;;  %2183 = vtanh.f32 %v2591_v18 }
 0xf4e   :  { %1233 = vrot.lane.b32.xlu0 %v2182_v19, %s2212_s30 }
 0xf53   :  { %v2184_v20 = vpop.eup %2183 }
 0xf54   :  { %1309 = vrot.lane.b32.xlu1 %v2184_v20, %s2212_s30 }
 0xfc0   :  { %v1234_v22 = vpop.permute.xlu0 %1233 }
 0xfc1   :  { %v2602_v23 = vmul.f32 %v1234_v22, %v1217_v63 }
 0xfc3   :  { %v1318_v24 = vpack.c.bf16 %v2602_v23, %v2602_v23 }
 0xfc5   :  { %1324 = vrot.lane.b32.xlu2 %v1318_v24, %s2213_s13 }
 0xfc6   :  { %v1310_v47 = vpop.permute.xlu1 %1309 }
 0xfc7   :  { %v1312_v25 = vmul.f32 %v1310_v47, %v1293_v12 }
 0xfc9   :  { %v1313_v26 = vpack.c.bf16 %v1312_v25, %v1312_v25 }
 0xfcb   :  { %1355 = vrot.lane.b32.xlu0 %v1313_v26, %s2213_s13 }
0x101f   :  { %v1325_v32 = vpop.permute.xlu2 %1324 }
0x1020   :  { %1955 = vmatmul.msk.bf16.vlgmr.msra.gmra.mxu3 %vm149_vm6, %v1325_v32 }
0x103d   :  { %v1356_v33 = vpop.permute.xlu0 %1355 }
0x103e   :  { %1964 = vmatmul.msk.bf16.vlgmr.msra.gmra.mxu0 %vm149_vm6, %v1356_v33  ;;  %1974 = vmatmul.msk.bf16.vlgmr.msrb.gmra.mxu1 %vm149_vm6, %v1356_v33 }
0x10a3   :  { %v1350_v34 = vpop.f32.mrf.mxu3 }
0x10ab   :  { %v1352_v36 = vpop.f32.mrf.mxu3 }
0x10ac   :  { %v2067_v36 = vld [vmem:[%s2740_s4 + $0x8] sm:$0xff] }
0x10ad   :  { %1533 = vmatpush.bf16.msrb.mxu2 %v2067_v36 }
0x10bb   :  { %v1381_v37 = vpop.f32.mrf.mxu0  ;;  %v1456_v6 = vpop.f32.mrf.mxu1 }
0x10bc   :  { %v1382_v38 = vadd.f32 %v1381_v37, %v1350_v34  ;;  %v1460_v55 = vadd.f32 %v1456_v6, %v2349_v51  ;;  %v2066_v37 = vld [vmem:[%s2740_s4] sm:$0xff] }
0x10bd   :  { %1534 = vmatpush.bf16.msrb.mxu2 %v2066_v37 }
0x10be   :  { %v1385_v40 = vadd.f32 %v2627_v50, %v1382_v38  ;;  %v1461_v41 = vadd.f32 %v2579_v49, %v1460_v55 }
0x10c0   :  { %2185 = vtanh.f32 %v1385_v40  ;;  %v1975_v51 = vmul.f32 -1.442695, %v1461_v41  ;;  %v1965_v57 = vmul.f32 -1.442695, %v1385_v40 }
0x10c1   :  { %2187 = vtanh.f32 %v1461_v41 }
0x10c2   :  { %2189 = vpow2.f32 %v1975_v51 }
0x10c3   :  { %v1383_v43 = vpop.f32.mrf.mxu0  ;;  %v1458_v30 = vpop.f32.mrf.mxu1 }
0x10c6   :  { %v2186_v48 = vpop.eup %2185 }
0x10c7   :  { %v2188_v52 = vpop.eup %2187  ;;  %1408 = vrot.lane.b32.xlu1 %v2186_v48, %s2212_s30 }
0x10c8   :  { %1484 = vrot.lane.b32.xlu2 %v2188_v52, %s2212_s30  ;;  %v2190_v53 = vpop.eup %2189 }
0x10c9   :  { %v1465_v56 = vadd.f32 1.0, %v2190_v53 }
0x10cb   :  { %2191 = vrcp.f32 %v1465_v56  ;;  %v1477_v54 = vand.u32 2147483648, %v1465_v56  ;;  %vm1471_vm11 = vweird.f32 %v1465_v56  ;;  %v1475_v1 = vand.u32 2147483647, %v1465_v56 }
0x10cc   :  { %2193 = vpow2.f32 %v1965_v57 }
0x10cd   :  { %v1478_v3 = vor.u32 1.1754944e-38, %v1477_v54  ;;  %vm1476_vm13 = vcmp.eq.f32.partialorder %v1475_v1, 8.507059e+37 }
0x10d1   :  { %v2192_v35 = vpop.eup %2191 }
0x10d2   :  { %v1467_v39 = vmul.f32 %v2192_v35, %v1465_v56  ;;  %v2194_v59 = vpop.eup %2193  ;;  %vm1472_vm10 = vweird.f32 %v2192_v35 }
0x10d3   :  { %v1389_v61 = vadd.f32 1.0, %v2194_v59  ;;  %vm1473_vm12 = vmor %vm1471_vm11, %vm1472_vm10 }
0x10d4   :  { %v1468_v49 = vsub.f32 1.0, %v1467_v39 }
0x10d5   :  { %2195 = vrcp.f32 %v1389_v61  ;;  %v1401_v15 = vand.u32 2147483648, %v1389_v61  ;;  %vm1395_vm15 = vweird.f32 %v1389_v61  ;;  %v1399_v2 = vand.u32 2147483647, %v1389_v61 }
0x10d6   :  { %v1469_v60 = vmul.f32 %v2192_v35, %v1468_v49 }
0x10d7   :  { %v1402_v17 = vor.u32 1.1754944e-38, %v1401_v15  ;;  %vm1400_vm1 = vcmp.eq.f32.partialorder %v1399_v2, 8.507059e+37 }
0x10d8   :  { %v1470_v63 = vadd.f32 %v2192_v35, %v1469_v60 }
0x10da   :  { %v1474_v44 = vsel %vm1473_vm12, %v2192_v35, %v1470_v63 }
0x10db   :  { %v1479_v5 = vsel %vm1476_vm13, %v1478_v3, %v1474_v44  ;;  %v2196_v9 = vpop.eup %2195  ;;  %v2071_v3 = vld [vmem:[%s2743_s9 + $0x8] sm:$0xff] }
0x10dc   :  { %v1391_v10 = vmul.f32 %v2196_v9, %v1389_v61  ;;  %vm1396_vm14 = vweird.f32 %v2196_v9  ;;  %v1482_v45 = vmul.f32 %v1479_v5, %v2591_v18  ;;  %v2065_v18 = vld [vmem:[%s2741_s3 + $0x8] sm:$0xff]  ;;  %2072 = vmatpush.bf16.msra.mxu2 %v2071_v3  ;;  %1706 = vmatpush.bf16.msra.mxu1 %v2071_v3 }
0x10dd   :  { %vm1397_vm0 = vmor %vm1395_vm15, %vm1396_vm14  ;;  %1564 = vmatpush.bf16.msrb.mxu3 %v2065_v18  ;;  %v2069_v18 = vld [vmem:[%s2747_s7 + $0x8] sm:$0xff] }
0x10de   :  { %v1392_v58 = vsub.f32 1.0, %v1391_v10  ;;  %1648 = vmatpush.bf16.msrb.mxu0 %v2069_v18 }
0x10e0   :  { %v1393_v11 = vmul.f32 %v2196_v9, %v1392_v58 }
0x10e1   :  { %1565 = vmatpush.bf16.msrb.mxu3 %v2064_v28  ;;  %v2068_v28 = vld [vmem:[%s2747_s7] sm:$0xff] }
0x10e2   :  { %v1394_v12 = vadd.f32 %v2196_v9, %v1393_v11  ;;  %1649 = vmatpush.bf16.msrb.mxu0 %v2068_v28 }
0x10e4   :  { %v1398_v16 = vsel %vm1397_vm0, %v2196_v9, %v1394_v12 }
0x10e5   :  { %v1403_v19 = vsel %vm1400_vm1, %v1402_v17, %v1398_v16 }
0x10e6   :  { %v1406_v47 = vmul.f32 %v1403_v19, %v2587_v8 }
0x1122   :  { %v1485_v4 = vpop.permute.xlu2 %1484 }
0x1123   :  { %v1487_v62 = vmul.f32 %v1485_v4, %v1479_v5 }
0x1125   :  { %1489 = vrot.lane.b32.xlu1 %v1487_v62, %s2213_s13 }
0x1139   :  { %v1409_v46 = vpop.permute.xlu1 %1408 }
0x113a   :  { %v1411_v20 = vmul.f32 %v1409_v46, %v1403_v19 }
0x113c   :  { %1413 = vrot.lane.b32.xlu0 %v1411_v20, %s2213_s13 }
0x1197   :  { %v1490_v14 = vpop.permute.xlu1 %1489 }
0x1198   :  { %v1492_v22 = vadd.f32 %v1490_v14, %v1482_v45 }
0x119a   :  { %2197 = vtanh.f32 %v1492_v22 }
0x11a0   :  { %v2198_v24 = vpop.eup %2197 }
0x11a1   :  { %1495 = vrot.lane.b32.xlu0 %v2198_v24, %s2212_s30  ;;  %v2079_v24 = vld [vmem:[%s2744_s10] ss:$0 sm:$0xff] }
0x11ae   :  { %v1414_v25 = vpop.permute.xlu0 %1413 }
0x11af   :  { %v2638_v26 = vadd.f32 %v1414_v25, %v1406_v47 }
0x11b1   :  { %2199 = vtanh.f32 %v2638_v26 }
0x11b7   :  { %v2200_v27 = vpop.eup %2199 }
0x11b8   :  { %1419 = vrot.lane.b32.xlu2 %v2200_v27, %s2212_s30 }
0x1212   :  { %v1420_v29 = vpop.permute.xlu2 %1419 }
0x1213   :  { %v1496_v8 = vpop.permute.xlu0 %1495  ;;  %v1422_v31 = vmul.f32 %v1420_v29, %v1403_v19 }
0x1214   :  { %v1498_v32 = vmul.f32 %v1496_v8, %v1479_v5 }
0x1215   :  { %v1504_v33 = vpack.c.bf16 %v1422_v31, %v1422_v31 }
0x1216   :  { %v1499_v34 = vpack.c.bf16 %v1498_v32, %v1498_v32 }
0x1217   :  { %1510 = vrot.lane.b32.xlu1 %v1504_v33, %s2213_s13 }
0x1218   :  { %1541 = vrot.lane.b32.xlu2 %v1499_v34, %s2213_s13 }
0x1272   :  { %v1542_v6 = vpop.permute.xlu2 %1541 }
0x1273   :  { %1993 = vmatmul.msk.bf16.vlgmr.msrb.gmra.mxu3 %vm149_vm6, %v1542_v6 }
0x1289   :  { %v1511_v38 = vpop.permute.xlu1 %1510 }
0x128a   :  { %1984 = vmatmul.msk.bf16.vlgmr.msrb.gmra.mxu2 %vm149_vm6, %v1511_v38 }
0x12f6   :  { %v1567_v55 = vpop.f32.mrf.mxu3 }
0x12fe   :  { %v1569_v40 = vpop.f32.mrf.mxu3 }
0x130d   :  { %v1536_v41 = vpop.f32.mrf.mxu2 }
0x130e   :  { %v1568_v43 = vadd.f32 %v1567_v55, %v1536_v41 }
0x1310   :  { %v1571_v30 = vadd.f32 %v2627_v50, %v1568_v43  ;;  %v2080_v43 = vld [vmem:[%s2745_s8] ss:$0 sm:$0xff] }
0x1312   :  { %2201 = vtanh.f32 %v1571_v30  ;;  %v1994_v51 = vmul.f32 -1.442695, %v1571_v30 }
0x1314   :  { %2203 = vpow2.f32 %v1994_v51 }
0x1315   :  { %v1538_v48 = vpop.f32.mrf.mxu2 }
0x1318   :  { %v2202_v52 = vpop.eup %2201 }
0x1319   :  { %1594 = vrot.lane.b32.xlu0 %v2202_v52, %s2212_s30 }
0x131a   :  { %v2204_v53 = vpop.eup %2203 }
0x131b   :  { %v1575_v56 = vadd.f32 1.0, %v2204_v53 }
0x131d   :  { %2205 = vrcp.f32 %v1575_v56  ;;  %v1587_v59 = vand.u32 2147483648, %v1575_v56  ;;  %vm1581_vm3 = vweird.f32 %v1575_v56 }
0x1321   :  { %1052 = vrot.lane.b32.xlu0 %v2565_v21, %s2213_s13  ;;  %v1585_v21 = vand.u32 2147483647, %v1575_v56 }
0x1323   :  { %v2206_v50 = vpop.eup %2205  ;;  %vm1586_vm5 = vcmp.eq.f32.partialorder %v1585_v21, 8.507059e+37 }
0x1324   :  { %v1577_v35 = vmul.f32 %v2206_v50, %v1575_v56  ;;  %vm1582_vm2 = vweird.f32 %v2206_v50 }
0x1325   :  { %vm1583_vm4 = vmor %vm1581_vm3, %vm1582_vm2 }
0x1326   :  { %v1578_v57 = vsub.f32 1.0, %v1577_v35 }
0x1328   :  { %v1579_v39 = vmul.f32 %v2206_v50, %v1578_v57 }
0x1329   :  { %494 = vrot.lane.b32.xlu0 %v2431_v0, %s2213_s13  ;;  %v1588_v0 = vor.u32 1.1754944e-38, %v1587_v59 }
0x132a   :  { %v1580_v49 = vadd.f32 %v2206_v50, %v1579_v39 }
0x132c   :  { %v1584_v60 = vsel %vm1583_vm4, %v2206_v50, %v1580_v49 }
0x1331   :  { %680 = vrot.lane.b32.xlu0 %v2469_v7, %s2213_s13  ;;  %v1589_v7 = vsel %vm1586_vm5, %v1588_v0, %v1584_v60 }
0x1332   :  { %v1592_v4 = vmul.f32 %v1589_v7, %v2638_v26 }
0x138b   :  { %v1595_v61 = vpop.permute.xlu0 %1594 }
0x138c   :  { %v1597_v63 = vmul.f32 %v1595_v61, %v1589_v7 }
0x138e   :  { %1599 = vrot.lane.b32.xlu1 %v1597_v63, %s2213_s13 }
0x1393   :  { %v1053_v54 = vpop.permute.xlu0 %1052 }
0x1394   :  { %1056 = vst.msk [vmem:[#allocation3 + $0x20] sm:$0xff] %vm149_vm6, %v1053_v54 }
0x1396   :  { %1238 = vrot.lane.b32.xlu1 %v2602_v23, %s2213_s13  ;;  %v2070_v23 = vld [vmem:[%s2743_s9] sm:$0xff] }
0x1397   :  { %2073 = vmatpush.bf16.msra.mxu2 %v2070_v23  ;;  %1707 = vmatpush.bf16.msra.mxu1 %v2070_v23 }
0x139b   :  { %v495_v1 = vpop.permute.xlu0 %494  ;;  %v1660_v58 = vld [vmem:[#allocation3 + $0x20] sm:$0xff] }
0x139c   :  { %498 = vst.msk [vmem:[#allocation3 + $0x8] sm:$0xff] %vm149_vm6, %v495_v1 }
0x139e   :  { %1424 = vrot.lane.b32.xlu1 %v1422_v31, %s2213_s13 }
0x13a3   :  { %v681_v44 = vpop.permute.xlu0 %680  ;;  %v1657_v20 = vld [vmem:[#allocation3 + $0x8] sm:$0xff] }
0x13a4   :  { %684 = vst.msk [vmem:[#allocation3 + $0x10] sm:$0xff] %vm149_vm6, %v681_v44 }
0x13a6   :  { %866 = vrot.lane.b32.xlu1 %v2510_v13, %s2213_s13 }
0x13ab   :  { %v1658_v14 = vld [vmem:[#allocation3 + $0x10] sm:$0xff] }
0x1400   :  { %v1600_v5 = vpop.permute.xlu1 %1599 }
0x1401   :  { %v1602_v9 = vadd.f32 %v1600_v5, %v1592_v4 }
0x1403   :  { %2207 = vtanh.f32 %v1602_v9 }
0x1408   :  { %v1239_v62 = vpop.permute.xlu1 %1238 }
0x1409   :  { %v2208_v10 = vpop.eup %2207  ;;  %1242 = vst.msk [vmem:[#allocation3 + $0x28] sm:$0xff] %vm149_vm6, %v1239_v62 }
0x140a   :  { %1605 = vrot.lane.b32.xlu2 %v2208_v10, %s2212_s30 }
0x1410   :  { %v1425_v13 = vpop.permute.xlu1 %1424  ;;  %v1661_v11 = vld [vmem:[#allocation3 + $0x28] sm:$0xff] }
0x1411   :  { %1428 = vst.msk [vmem:[#allocation3 + $0x30] sm:$0xff] %vm149_vm6, %v1425_v13  ;;  %v1666_v12 = vpack.c.bf16 %v1661_v11, %v1660_v58 }
0x1412   :  { %309 = vrot.lane.b32.xlu2 %v2371_v42, %s2213_s13 }
0x1413   :  { %2014 = vmatmul.msk.bf16.vlgmr.msra.gmra.mxu2 %vm149_vm6, %v1666_v12 }
0x1418   :  { %v867_v15 = vpop.permute.xlu1 %866  ;;  %v1662_v31 = vld [vmem:[#allocation3 + $0x30] sm:$0xff] }
0x1419   :  { %870 = vst.msk [vmem:[#allocation3 + $0x18] sm:$0xff] %vm149_vm6, %v867_v15 }
0x1420   :  { %v1659_v42 = vld [vmem:[#allocation3 + $0x18] sm:$0xff] }
0x1421   :  { %v1665_v22 = vpack.c.bf16 %v1659_v42, %v1658_v14 }
0x1464   :  { %v1606_v2 = vpop.permute.xlu2 %1605 }
0x1465   :  { %v1608_v16 = vmul.f32 %v1606_v2, %v1589_v7 }
0x1467   :  { %1610 = vrot.lane.b32.xlu2 %v1608_v16, %s2213_s13  ;;  %v1615_v46 = vpack.c.bf16 %v1608_v16, %v1608_v16 }
0x146c   :  { %v310_v17 = vpop.permute.xlu2 %309 }
0x146d   :  { %312 = vst.msk [vmem:[#allocation3] sm:$0xff] %vm149_vm6, %v310_v17 }
0x146f   :  { %1625 = vrot.lane.b32.xlu2 %v1615_v46, %s2213_s13 }
0x1474   :  { %v1656_v19 = vld [vmem:[#allocation3] sm:$0xff] }
0x1475   :  { %v1664_v45 = vpack.c.bf16 %v1657_v20, %v1656_v19 }
0x1477   :  { %2012 = vmatmul.msk.bf16.vlgmr.msra.gmra.mxu1 %vm149_vm6, %v1664_v45 }
0x1487   :  { %2013 = vmatmul.msk.bf16.gmra.mxu1 %vm149_vm6, %v1665_v22 }
0x1496   :  { %v1719_v47 = vpop.f32.mrf.mxu2 }
0x1497   :  { %v1720_v25 = vadd.f32 %v2079_v24, %v1719_v47 }
0x1499   :  { %1733 = vst [vmem:[%s2746_s12 + $0x20] sm:$0xff] %v1720_v25 }
0x149e   :  { %v1721_v26 = vpop.f32.mrf.mxu2 }
0x149f   :  { %v1722_v27 = vadd.f32 %v2079_v24, %v1721_v26 }
0x14a1   :  { %1734 = vst [vmem:[%s2746_s12 + $0x28] sm:$0xff] %v1722_v27 }
0x14c1   :  { %v1611_v29 = vpop.permute.xlu2 %1610 }
0x14c2   :  { %1614 = vst.msk [vmem:[#allocation3 + $0x38] sm:$0xff] %vm149_vm6, %v1611_v29 }
0x14c9   :  { %v1626_v8 = vpop.permute.xlu2 %1625  ;;  %v1663_v32 = vld [vmem:[#allocation3 + $0x38] sm:$0xff] }
0x14ca   :  { %2003 = vmatmul.msk.bf16.vlgmr.msrb.gmra.mxu0 %vm149_vm6, %v1626_v8  ;;  %v1667_v33 = vpack.c.bf16 %v1663_v32, %v1662_v31 }
0x14cc   :  { %2015 = vmatmul.msk.bf16.gmra.mxu2 %vm149_vm6, %v1667_v33 }
0x14f4   :  { %v1709_v34 = vpop.f32.mrf.mxu1 }
0x14f5   :  { %v1710_v36 = vadd.f32 %v2079_v24, %v1709_v34 }
0x14f7   :  { %1729 = vst [vmem:[%s2746_s12] sm:$0xff] %v1710_v36 }
0x14fc   :  { %v1711_v37 = vpop.f32.mrf.mxu1 }
0x14fd   :  { %v1712_v6 = vadd.f32 %v2079_v24, %v1711_v37 }
0x14ff   :  { %1730 = vst [vmem:[%s2746_s12 + $0x8] sm:$0xff] %v1712_v6 }
0x1504   :  { %v1714_v38 = vpop.f32.mrf.mxu1 }
0x1505   :  { %v1715_v55 = vadd.f32 %v2079_v24, %v1714_v38 }
0x1507   :  { %1731 = vst [vmem:[%s2746_s12 + $0x10] sm:$0xff] %v1715_v55 }
0x150c   :  { %v1716_v40 = vpop.f32.mrf.mxu1 }
0x150d   :  { %v1717_v41 = vadd.f32 %v2079_v24, %v1716_v40 }
0x150f   :  { %1732 = vst [vmem:[%s2746_s12 + $0x18] sm:$0xff] %v1717_v41 }
0x1547   :  { %v1651_v30 = vpop.f32.mrf.mxu0 }
0x1548   :  { %v1652_v48 = vadd.f32 %v2080_v43, %v1651_v30 }
0x154a   :  { %1655 = vst [vmem:[%s2748_s11] sm:$0xff] %v1652_v48 }
0x154f   :  { %v1653_v52 = vpop.f32.mrf.mxu0  ;;  %v1724_v51 = vpop.f32.mrf.mxu2 }
0x1550   :  { %v1725_v53 = vadd.f32 %v2079_v24, %v1724_v51 }
0x1552   :  { %1735 = vst [vmem:[%s2746_s12 + $0x30] sm:$0xff] %v1725_v53 }
0x1557   :  { %v1726_v56 = vpop.f32.mrf.mxu2 }
0x1558   :  { %v1727_v50 = vadd.f32 %v2079_v24, %v1726_v56 }
0x155a   :  { %1736 = vst [vmem:[%s2746_s12 + $0x38] sm:$0xff] %v1727_v50 }

</bundles_post_ra>
